<compile_context>
chip_gen: v7x
topology: tpu7x:2x2x1
jax: 0.10.0
libtpu: 0.0.40
codegen_flags: <defaults>
</compile_context>

<pallas_src>
import math
from itertools import combinations_with_replacement

import jax
import jax.numpy as jnp
from jax.experimental import pallas as pl
from jax.experimental.pallas import tpu as pltpu


def _round_up(x, m):
    return ((x + m - 1) // m) * m


# ----------------------------------------------------------------------------
# Veronese map (glue, plain JAX): rows = monomials of total degree 0..n.
# ----------------------------------------------------------------------------
def generate_veronese(x, n):
    """x: (dims, npoints) -> v_x: (dim_veronese, npoints)."""
    dims, npoints = x.shape
    rows = []
    for k in range(n + 1):
        for combo in combinations_with_replacement(range(dims), k):
            m = jnp.ones((npoints,), dtype=x.dtype)
            for i in combo:
                m = m * x[i]
            rows.append(m)
    return jnp.stack(rows, axis=0)


# ----------------------------------------------------------------------------
# Pallas kernel: packed per-row quadratic forms.
#   u_ref    : (Tg, G*D)  -- each VMEM row packs G original points
#   mblk_ref : (G*D, G*D) -- block-diagonal M_inv (resident)
#   sel_ref  : (G*D, G)   -- 0/1 per-group column-sum selector (resident)
#   o_ref    : (Tg, G)    -- o[g, j] = u_{G*g+j}^T M_inv u_{G*g+j}
# ----------------------------------------------------------------------------
def _quadform_kernel(u_ref, mblk_ref, sel_ref, o_ref):
    u = u_ref[...]                                                   # (Tg, G*D)
    y = jnp.dot(u, mblk_ref[...], preferred_element_type=jnp.float32)
    # Per-group reduction as a natural-orientation MXU matmul (no XLU transpose).
    o_ref[...] = jnp.dot(y * u, sel_ref[...], preferred_element_type=jnp.float32)


def _pick_group(d):
    """Points packed per VMEM row; keep G*D within ~2 lane tiles."""
    for g in (8, 4, 2, 1):
        if g * d <= 256:
            return g
    return 1


def _pick_tile_bs(bs, d, group, *, max_tile=16384, min_tile=4096,
                  vmem_budget_bytes=8 << 20, target_tiles=4):
    """Rows per grid step.  Big enough to amortize the ~0.35 us/step overhead;
    VMEM accounting covers ~6 lane-padded f32 row-slabs of the tile
    (2x double-buffered input, y, y*u, 2x output buffers) and stays well under
    v5e's 16 MiB scoped-VMEM default; keeps >= target_tiles grid steps so the
    1-D "parallel" grid still splits across both v7x TensorCores."""
    align = 8 * group
    lanes = _round_up(group * d, 128)
    groups_cap = max(8, ((vmem_budget_bytes // (6 * lanes * 4)) // 8) * 8)
    tile = min(max_tile, groups_cap * group)
    tile = min(tile, max(min_tile, _round_up(pl.cdiv(bs, target_tiles), align)))
    tile = min(tile, _round_up(bs, align))
    return max(align, tile)


def quadratic_form(U, M_inv, *, tile_bs=None, min_pallas_rows=8192):
    """U: (BS, D), M_inv: (D, D) -> (BS, 1) float32 quadratic forms."""
    U = U.astype(jnp.float32)
    M_inv = M_inv.astype(jnp.float32)
    BS, D = U.shape

    if BS < min_pallas_rows:
        # Small batch: per-step/launch overhead dominates; let XLA fuse.
        return jnp.einsum("bd,de,be->b", U, M_inv, U).reshape(BS, 1)

    G = _pick_group(D)
    tile_bs = int(tile_bs or _pick_tile_bs(BS, D, G))

    # Pad rows to an exact multiple of the tile: no out-of-bounds reads; the
    # zero padding rows produce 0 and are sliced off below.
    BS_pad = _round_up(BS, tile_bs)
    if BS_pad != BS:
        U = jnp.pad(U, ((0, BS_pad - BS), (0, 0)))

    num_groups = BS_pad // G
    tile_groups = tile_bs // G
    num_tiles = num_groups // tile_groups

    # Tiny resident operands: 8-way block-diagonal M_inv and the 0/1 selector
    # that sums each length-D sub-segment of a packed row.
    M_blk = jnp.kron(jnp.eye(G, dtype=jnp.float32), M_inv)                   # (G*D, G*D)
    sel = jnp.kron(jnp.eye(G, dtype=jnp.float32),
                   jnp.ones((D, 1), dtype=jnp.float32))                      # (G*D, G)

    # Free row-major reshape: G consecutive points per VMEM row (dense DMA rows).
    U_packed = U.reshape(num_groups, G * D)

    out = pl.pallas_call(
        _quadform_kernel,
        out_shape=jax.ShapeDtypeStruct((num_groups, G), jnp.float32),
        grid=(num_tiles,),
        in_specs=[
            # Streamed operand: one (tile_groups, G*D) slab per grid step.
            pl.BlockSpec((tile_groups, G * D), lambda i: (i, 0)),
            # Constant index maps -> stay resident in VMEM across steps.
            pl.BlockSpec((G * D, G * D), lambda i: (0, 0)),
            pl.BlockSpec((G * D, G), lambda i: (0, 0)),
        ],
        out_specs=pl.BlockSpec((tile_groups, G), lambda i: (i, 0)),
        compiler_params=pltpu.CompilerParams(
            dimension_semantics=("parallel",),   # shards tiles over both TCs on v7x
        ),
    )(U_packed, M_blk, sel)

    # Row-major unpack: out[g, j] is the quadratic form of original row G*g + j.
    return out.reshape(-1)[:BS].reshape(BS, 1)


# ----------------------------------------------------------------------------
# JAX port of the Q_real_M module (stateful wrapper; Pallas for the hot path)
# ----------------------------------------------------------------------------
class QRealM:
    def __init__(self, x_size, n):
        self.n = n
        self.x_size = x_size
        self.dim_veronese = int(math.comb(x_size + n, n))
        self.veroneses = []
        self.has_M_inv = False
        self.M_inv = None
        self.build_M = False
        self._eval_jit = jax.jit(self._eval)

    def _eval(self, x, M_inv):
        npoints, dims = x.shape
        v_x = generate_veronese(x.reshape(dims, npoints), self.n)
        D, BS = v_x.shape
        # reproduce torch's .view(BS, 1, D) / .view(BS, D, 1): row-major reshape
        U = v_x.reshape(BS, D)
        return quadratic_form(U, M_inv).reshape(BS, 1, 1)

    def __call__(self, x):
        if (not self.has_M_inv) and self.build_M:
            npoints, dims = x.shape
            v_x = generate_veronese(x.reshape(dims, npoints), self.n)
            self.veroneses.append(v_x)
            return x
        elif self.has_M_inv:
            return self._eval_jit(x, self.M_inv)
        return x

    def set_build_M(self):
        self.build_M = True

    def create_M(self):
        nbatches = len(self.veroneses)
        d, bs = self.veroneses[0].shape
        V = jnp.concatenate(self.veroneses, axis=1)            # (d, bs*nbatches)
        U = V.reshape(bs * nbatches, d)                        # torch .view quirk
        M = (U.T @ U) / float(bs * nbatches)                   # mean of outer products
        # TODO(synk): torch.inverse has no clean Pallas equivalent; a Cholesky
        # solve would be better conditioned, but matrix inverse is the spec.
        self.M_inv = jnp.linalg.inv(M)
        self.has_M_inv = True


# ----------------------------------------------------------------------------
if __name__ == "__main__":
    key = jax.random.PRNGKey(0)
    k_inl, k_qry, k_small = jax.random.split(key, 3)

    x_size, n = 4, 2                  # dim_veronese = comb(6, 2) = 15
    n_inliers = 256
    npoints = 20000                   # big enough to exercise the tiled Pallas path

    model = QRealM(x_size, n)

    # Phase 1: collect veroneses of (deterministic) inlier samples, build M_inv.
    model.set_build_M()
    inliers = jax.random.normal(k_inl, (n_inliers, x_size), dtype=jnp.float32)
    model(inliers)
    model.create_M()

    # Phase 2a: large batch -> packed tiled Pallas quadratic-form kernel.
    x = jax.random.normal(k_qry, (npoints, x_size), dtype=jnp.float32)
    out = jax.block_until_ready(model(x))
    assert out.shape == (npoints, 1, 1)

    # Reference check against plain-JAX einsum (same .view semantics).
    v_ref = generate_veronese(x.reshape(x_size, npoints), n)
    U_ref = v_ref.reshape(npoints, model.dim_veronese)
    ref = jnp.einsum("bd,de,be->b", U_ref, model.M_inv, U_ref).reshape(npoints, 1, 1)
    assert bool(jnp.allclose(out, ref, rtol=5e-3, atol=5e-3)), \
        float(jnp.max(jnp.abs(out - ref)))

    # Phase 2b: tiny batch -> fused-einsum fallback (avoids kernel-launch overhead).
    xs = jax.random.normal(k_small, (8, x_size), dtype=jnp.float32)
    out_s = jax.block_until_ready(model(xs))
    assert out_s.shape == (8, 1, 1)
    v_s = generate_veronese(xs.reshape(x_size, 8), n)
    U_s = v_s.reshape(8, model.dim_veronese)
    ref_s = jnp.einsum("bd,de,be->b", U_s, model.M_inv, U_s).reshape(8, 1, 1)
    assert bool(jnp.allclose(out_s, ref_s, rtol=5e-3, atol=5e-3))

    print("KERNEL_OK")
</pallas_src>

<mosaic_0001>
module attributes {stable_mosaic.version = 11 : i64} {
  func.func @_quadform_kernel(%arg0: i32, %arg1: memref<632x120xf32, #tpu.memory_space<vmem>>, %arg2: memref<120x120xf32, #tpu.memory_space<vmem>>, %arg3: memref<120x8xf32, #tpu.memory_space<vmem>>, %arg4: memref<632x8xf32, #tpu.memory_space<vmem>>) attributes {dimension_semantics = [#tpu.dimension_semantics<parallel>], iteration_bounds = array<i64: 4>, scalar_prefetch = 0 : i64, scratch_operands = 0 : i64, tpu.core_type = #tpu.core_type<tc>, window_params = [{transform_indices = @transform_0, window_bounds = array<i64: 632, 120>}, {pipeline_mode = #tpu.pipeline_mode<synchronous>, transform_indices = @transform_1, window_bounds = array<i64: 120, 120>}, {pipeline_mode = #tpu.pipeline_mode<synchronous>, transform_indices = @transform_2, window_bounds = array<i64: 120, 8>}, {transform_indices = @transform_3, window_bounds = array<i64: 632, 8>}]} {
    %c0 = arith.constant 0 : index
    %c0_0 = arith.constant 0 : index
    %0 = vector.load %arg1[%c0, %c0_0] : memref<632x120xf32, #tpu.memory_space<vmem>>, vector<632x120xf32>
    %c0_1 = arith.constant 0 : index
    %c0_2 = arith.constant 0 : index
    %1 = vector.load %arg2[%c0_1, %c0_2] : memref<120x120xf32, #tpu.memory_space<vmem>>, vector<120x120xf32>
    %cst = arith.constant dense<0.000000e+00> : vector<632x120xf32>
    %2 = tpu.matmul %0, %1, %cst {dimension_numbers = #tpu.dot_dimension_numbers<[1], [0], [0], [1], [0, 0, 1, 1], [], []>} : vector<632x120xf32>, vector<120x120xf32>, vector<632x120xf32> -> vector<632x120xf32>
    %3 = arith.mulf %2, %0 : vector<632x120xf32>
    %c0_3 = arith.constant 0 : index
    %c0_4 = arith.constant 0 : index
    %4 = vector.load %arg3[%c0_3, %c0_4] : memref<120x8xf32, #tpu.memory_space<vmem>>, vector<120x8xf32>
    %cst_5 = arith.constant dense<0.000000e+00> : vector<632x8xf32>
    %5 = tpu.matmul %3, %4, %cst_5 {dimension_numbers = #tpu.dot_dimension_numbers<[1], [0], [0], [1], [0, 0, 1, 1], [], []>} : vector<632x120xf32>, vector<120x8xf32>, vector<632x8xf32> -> vector<632x8xf32>
    %c0_6 = arith.constant 0 : index
    %c0_7 = arith.constant 0 : index
    %6 = vector.load %arg4[%c0_6, %c0_7] : memref<632x8xf32, #tpu.memory_space<vmem>>, vector<632x8xf32>
    tpu.vector_store %arg4[%c0_6, %c0_7], %5 {strides = array<i32>} : memref<632x8xf32, #tpu.memory_space<vmem>>, vector<632x8xf32>,
    return
  }
  func.func @transform_0(%arg0: i32) -> (i32, i32) {
    %c0_i32 = arith.constant 0 : i32
    %c0_i32_0 = arith.constant 0 : i32
    return %arg0, %c0_i32 : i32, i32
  }
  func.func @transform_1(%arg0: i32) -> (i32, i32) {
    %c0_i32 = arith.constant 0 : i32
    %c0_i32_0 = arith.constant 0 : i32
    %c0_i32_1 = arith.constant 0 : i32
    return %c0_i32, %c0_i32_0 : i32, i32
  }
  func.func @transform_2(%arg0: i32) -> (i32, i32) {
    %c0_i32 = arith.constant 0 : i32
    %c0_i32_0 = arith.constant 0 : i32
    %c0_i32_1 = arith.constant 0 : i32
    return %c0_i32, %c0_i32_0 : i32, i32
  }
  func.func @transform_3(%arg0: i32) -> (i32, i32) {
    %c0_i32 = arith.constant 0 : i32
    %c0_i32_0 = arith.constant 0 : i32
    return %arg0, %c0_i32 : i32, i32
  }
}

</mosaic_0001>

<bundles_post_ra>
// kernel: _eval.1
= control target key start
LH: loop header
LB: loop body
LE: loop exit
PB: predicated region body
PF: predicated region fallthrough
CT: control target
= control target key end

     0   :  { %s2866_s12 = smov 0   ;;  %s4027_s0 = inlined_call_operand.vmem [shape: f32[2528,120], index: 0, kind: input, shape index: {}]   ;;  %s4028_s1 = inlined_call_operand.vmem [shape: f32[120,120], index: 1, kind: input, shape index: {}]   ;;  %s4029_s2 = inlined_call_operand.vmem [shape: f32[120,8], index: 2, kind: input, shape index: {}]   ;;  %s4030_s3 = inlined_call_operand.vmem [shape: f32[2528,8], index: 3, kind: output, shape index: {}]  }
   0x1 LB: > { %s1893_s13 = sadd.s32 4294967295, %s2841_s12   ;;  %p1897_p0 = scmp.ge.s32.totalorder %s2841_s12, 1  ;;  %s2841_s12 = sphi %s2866_s12, %s13_s12  }
   0x2   : > { %p138_p1 = scmp.lt.s32.totalorder %s2841_s12, 5 }
   0x4   : > { %p139_p2 = pnand %p1897_p0, %p138_p1 }
   0x5   : > { %v253_v0 = vld [vmem:[%s4028_s1] sm:$0xff] (!%p139_p2)  ;;  %v254_v1 = vld [vmem:[%s4028_s1 + $0x8] sm:$0xff] (!%p139_p2)  ;;  %v255_v2 = vld [vmem:[%s4028_s1 + $0x10] sm:$0xff] (!%p139_p2)  ;;  %v2843_v3 = vmov (!%p139_p2), 0.0|0.0   ;;  %vm2844_vm0 = vmmov (!%p139_p2), 0   ;;  %v2845_v6 = vmov (!%p139_p2), 0.0  }
   0x6   : > { %142 = sbr.rel (%p139_p2) target bundleno = 776 (0x308), region = 32  ;;  %2782 = vmatprep.subr.bf16.mxu0 (!%p139_p2), %v2843_v3  ;;  %v2783_v4 = vpack.c.bf16 (!%p139_p2), %v254_v1, %v253_v0  ;;  %v256_v5 = vld [vmem:[%s4028_s1 + $0x18] sm:$0xff] (!%p139_p2)  ;;  %2278 = vmatprep.mubr.msk.f32.mxu0 (!%p139_p2), %vm2844_vm0, %v2845_v6  ;;  %v257_v8 = vld [vmem:[%s4028_s1 + $0x20] sm:$0xff] (!%p139_p2)  ;;  %v258_v9 = vld [vmem:[%s4028_s1 + $0x28] sm:$0xff] (!%p139_p2)  ;;  %vm268_vm1 = vcmask (!%p139_p2), 982016   ;;  %vm1757_vm2 = vcmask (!%p139_p2), 64512  }
   0x7   : > { %2803 = vmatprep.subr.bf16.mxu1 (!%p139_p2), %v2843_v3  ;;  %2545 = vmatprep.mubr.msk.f32.mxu1 (!%p139_p2), %vm2844_vm0, %v2845_v6  ;;  %v2786_v7 = vpack.c.bf16 (!%p139_p2), %v256_v5, %v255_v2  ;;  %v2789_v10 = vpack.c.bf16 (!%p139_p2), %v258_v9, %v257_v8  ;;  %v259_v11 = vld [vmem:[%s4028_s1 + $0x30] sm:$0xff] (!%p139_p2)  ;;  %v260_v12 = vld [vmem:[%s4028_s1 + $0x38] sm:$0xff] (!%p139_p2)  ;;  %s162_s30 = smul.u32 (!%p139_p2), 79, %s1893_s13  ;;  %v261_v14 = vld [vmem:[%s4028_s1 + $0x40] sm:$0xff] (!%p139_p2) }
   0x8   : > { %2784 = vmatpush3.bf16.msra.mxu0 (!%p139_p2), %v2783_v4  ;;  %v2792_v13 = vpack.c.bf16 (!%p139_p2), %v260_v12, %v259_v11  ;;  %v262_v15 = vld [vmem:[%s4028_s1 + $0x48] sm:$0xff] (!%p139_p2)  ;;  %v263_v17 = vld [vmem:[%s4028_s1 + $0x50] sm:$0xff] (!%p139_p2)  ;;  %v264_v18 = vld [vmem:[%s4028_s1 + $0x58] sm:$0xff] (!%p139_p2) }
   0x9   : > { %2785 = vmatprep.subr.bf16.mxu0 (!%p139_p2), %v2843_v3  ;;  %v2795_v16 = vpack.c.bf16 (!%p139_p2), %v262_v15, %v261_v14  ;;  %p163_p3 = scmp.lt.s32.totalorder (!%p139_p2), %s162_s30, 315  ;;  %v2798_v19 = vpack.c.bf16 (!%p139_p2), %v264_v18, %v263_v17  ;;  %v265_v20 = vld [vmem:[%s4028_s1 + $0x60] sm:$0xff] (!%p139_p2)  ;;  %v266_v21 = vld [vmem:[%s4028_s1 + $0x68] sm:$0xff] (!%p139_p2)  ;;  %v267_v23 = vld [vmem:[%s4028_s1 + $0x70] sm:$0xff] (!%p139_p2) }
   0xa   : > { %v2801_v22 = vpack.c.bf16 (!%p139_p2), %v266_v21, %v265_v20  ;;  %v1045_v39 = vld [vmem:[%s4029_s2] sm:$0xff] (!%p139_p2)  ;;  %v1046_v40 = vld [vmem:[%s4029_s2 + $0x8] sm:$0xff] (!%p139_p2)  ;;  %v1047_v43 = vld [vmem:[%s4029_s2 + $0x10] sm:$0xff] (!%p139_p2) }
   0xb   : > { %v2804_v41 = vpack.c.bf16 (!%p139_p2), %v1046_v40, %v1045_v39  ;;  %v1048_v44 = vld [vmem:[%s4029_s2 + $0x18] sm:$0xff] (!%p139_p2)  ;;  %v1049_v47 = vld [vmem:[%s4029_s2 + $0x20] sm:$0xff] (!%p139_p2)  ;;  %v1050_v48 = vld [vmem:[%s4029_s2 + $0x28] sm:$0xff] (!%p139_p2) }
   0xc   : > { %2787 = vmatpush3.bf16.msra.mxu0 (!%p139_p2), %v2786_v7  ;;  %v2807_v45 = vpack.c.bf16 (!%p139_p2), %v1048_v44, %v1047_v43  ;;  %v2810_v49 = vpack.c.bf16 (!%p139_p2), %v1050_v48, %v1049_v47  ;;  %v1051_v51 = vld [vmem:[%s4029_s2 + $0x30] sm:$0xff] (!%p139_p2)  ;;  %v1052_v52 = vld [vmem:[%s4029_s2 + $0x38] sm:$0xff] (!%p139_p2)  ;;  %v1053_v55 = vld [vmem:[%s4029_s2 + $0x40] sm:$0xff] (!%p139_p2) }
   0xd   : > { %2788 = vmatprep.subr.bf16.mxu0 %v2843_v3  ;;  %s4032_s30 = smov (!%p163_p3, %s162_s30), 315  ;;  %2805 = vmatpush3.bf16.msra.mxu1 %v2804_v41  ;;  %v2813_v53 = vpack.c.bf16 %v1052_v52, %v1051_v51  ;;  %v1054_v56 = vld [vmem:[%s4029_s2 + $0x48] sm:$0xff]  ;;  %v1055_v59 = vld [vmem:[%s4029_s2 + $0x50] sm:$0xff]  ;;  %v1056_v60 = vld [vmem:[%s4029_s2 + $0x58] sm:$0xff] }
   0xe   : > { %s1898_s17 = sshll.u32 %s4032_s30, 3  ;;  %2806 = vmatprep.subr.bf16.mxu1 %v2843_v3  ;;  %v2816_v57 = vpack.c.bf16 %v1054_v56, %v1053_v55  ;;  %v2819_v61 = vpack.c.bf16 %v1056_v60, %v1055_v59  ;;  %v1057_v63 = vld [vmem:[%s4029_s2 + $0x60] sm:$0xff]  ;;  %v1058_v0 = vld [vmem:[%s4029_s2 + $0x68] sm:$0xff] }
   0xf   : > { %s2936_s20 = scalar_lea.vmem %s4027_s0, %s1898_s17  ;;  %v2822_v1 = vpack.c.bf16 %v1058_v0, %v1057_v63  ;;  %s3760_s5 = scalar_lea.vmem %s4030_s3, %s1898_s17 }
  0x10   : > { %2790 = vmatpush3.bf16.msra.mxu0 %v2789_v10  ;;  %v2943_v24 = vld [vmem:[%s2936_s20] sm:$0xff]  ;;  %v2950_v25 = vld [vmem:[%s2936_s20 + $0x8] sm:$0xff]  ;;  %v2957_v26 = vld [vmem:[%s2936_s20 + $0x10] sm:$0xff] }
  0x11   : > { %2791 = vmatprep.subr.bf16.mxu0 %v2843_v3  ;;  %v2964_v27 = vld [vmem:[%s2936_s20 + $0x18] sm:$0xff]  ;;  %v2971_v28 = vld [vmem:[%s2936_s20 + $0x20] sm:$0xff]  ;;  %v2978_v29 = vld [vmem:[%s2936_s20 + $0x28] sm:$0xff]  ;;  %2808 = vmatpush3.bf16.msra.mxu1 %v2807_v45 }
  0x12   : > { %v2985_v30 = vld [vmem:[%s2936_s20 + $0x30] sm:$0xff]  ;;  %v2992_v31 = vld [vmem:[%s2936_s20 + $0x38] sm:$0xff]  ;;  %v2999_v32 = vld [vmem:[%s2936_s20 + $0x40] sm:$0xff]  ;;  %2809 = vmatprep.subr.bf16.mxu1 %v2843_v3 }
  0x13   : > { %v3006_v33 = vld [vmem:[%s2936_s20 + $0x48] sm:$0xff]  ;;  %v3013_v34 = vld [vmem:[%s2936_s20 + $0x50] sm:$0xff]  ;;  %v3020_v35 = vld [vmem:[%s2936_s20 + $0x58] sm:$0xff] }
  0x14   : > { %2793 = vmatpush3.bf16.msra.mxu0 %v2792_v13  ;;  %v3027_v36 = vld [vmem:[%s2936_s20 + $0x60] sm:$0xff]  ;;  %v3034_v37 = vld [vmem:[%s2936_s20 + $0x68] sm:$0xff]  ;;  %v3041_v38 = vld [vmem:[%s2936_s20 + $0x70] sm:$0xff] }
  0x15   : > { %2794 = vmatprep.subr.bf16.mxu0 %v2843_v3  ;;  %v3054_v42 = vld [vmem:[%s2936_s20 + $0x78] sm:$0xff]  ;;  %v3068_v46 = vld [vmem:[%s2936_s20 + $0x80] sm:$0xff]  ;;  %v3082_v50 = vld [vmem:[%s2936_s20 + $0x88] sm:$0xff]  ;;  %2811 = vmatpush3.bf16.msra.mxu1 %v2810_v49 }
  0x16   : > { %2812 = vmatprep.subr.bf16.mxu1 %v2843_v3  ;;  %v3096_v54 = vld [vmem:[%s2936_s20 + $0x90] sm:$0xff]  ;;  %v3110_v58 = vld [vmem:[%s2936_s20 + $0x98] sm:$0xff]  ;;  %v3124_v62 = vld [vmem:[%s2936_s20 + $0xa0] sm:$0xff] }
  0x17   : > { %v3138_v2 = vld [vmem:[%s2936_s20 + $0xa8] sm:$0xff]  ;;  %v3149_v4 = vld [vmem:[%s2936_s20 + $0xb0] sm:$0xff]  ;;  %v3156_v5 = vld [vmem:[%s2936_s20 + $0xb8] sm:$0xff] }
  0x18   : > { %2796 = vmatpush3.bf16.msra.mxu0 %v2795_v16  ;;  %v3163_v7 = vld [vmem:[%s2936_s20 + $0xc0] sm:$0xff]  ;;  %v3170_v8 = vld [vmem:[%s2936_s20 + $0xc8] sm:$0xff]  ;;  %v3177_v9 = vld [vmem:[%s2936_s20 + $0xd0] sm:$0xff] }
  0x19   : > { %2797 = vmatprep.subr.bf16.mxu0 %v2843_v3  ;;  %2814 = vmatpush3.bf16.msra.mxu1 %v2813_v53  ;;  %v3184_v10 = vld [vmem:[%s2936_s20 + $0xd8] sm:$0xff]  ;;  %v3191_v11 = vld [vmem:[%s2936_s20 + $0xe0] sm:$0xff]  ;;  %v3198_v12 = vld [vmem:[%s2936_s20 + $0xe8] sm:$0xff] }
  0x1a   : > { %2815 = vmatprep.subr.bf16.mxu1 %v2843_v3  ;;  %v3205_v13 = vld [vmem:[%s2936_s20 + $0xf0] sm:$0xff]  ;;  %v3212_v14 = vld [vmem:[%s2936_s20 + $0xf8] sm:$0xff]  ;;  %v3219_v15 = vld [vmem:[%s2936_s20 + $0x100] sm:$0xff] }
  0x1b   : > { %v3226_v16 = vld [vmem:[%s2936_s20 + $0x108] sm:$0xff]  ;;  %v3233_v17 = vld [vmem:[%s2936_s20 + $0x110] sm:$0xff]  ;;  %v3240_v18 = vld [vmem:[%s2936_s20 + $0x118] sm:$0xff] }
  0x1c   : > { %2799 = vmatpush3.bf16.msra.mxu0 %v2798_v19  ;;  %v3247_v19 = vld [vmem:[%s2936_s20 + $0x120] sm:$0xff]  ;;  %v3254_v20 = vld [vmem:[%s2936_s20 + $0x128] sm:$0xff]  ;;  %v3261_v21 = vld [vmem:[%s2936_s20 + $0x130] sm:$0xff] }
  0x1d   : > { %2800 = vmatprep.subr.bf16.mxu0 %v2843_v3  ;;  %2817 = vmatpush3.bf16.msra.mxu1 %v2816_v57  ;;  %v3282_v39 = vld [vmem:[%s2936_s20 + $0x148] sm:$0xff]  ;;  %v3289_v40 = vld [vmem:[%s2936_s20 + $0x150] sm:$0xff]  ;;  %v3296_v41 = vld [vmem:[%s2936_s20 + $0x158] sm:$0xff] }
  0x1e   : > { %2818 = vmatprep.subr.bf16.mxu1 %v2843_v3  ;;  %v3303_v43 = vld [vmem:[%s2936_s20 + $0x160] sm:$0xff]  ;;  %v3310_v44 = vld [vmem:[%s2936_s20 + $0x168] sm:$0xff]  ;;  %v3317_v45 = vld [vmem:[%s2936_s20 + $0x170] sm:$0xff] }
  0x1f   : > { %v3324_v47 = vld [vmem:[%s2936_s20 + $0x178] sm:$0xff]  ;;  %v3331_v48 = vld [vmem:[%s2936_s20 + $0x180] sm:$0xff]  ;;  %v3338_v49 = vld [vmem:[%s2936_s20 + $0x188] sm:$0xff] }
  0x20   : > { %2802 = vmatpush3.bf16.msra.mxu0 %v2801_v22  ;;  %v3268_v22 = vld [vmem:[%s2936_s20 + $0x138] sm:$0xff]  ;;  %v3345_v51 = vld [vmem:[%s2936_s20 + $0x190] sm:$0xff]  ;;  %v3359_v53 = vld [vmem:[%s2936_s20 + $0x1a0] sm:$0xff] }
  0x21   : > { %2276 = vmatprep.subr.mxu0 %v2845_v6  ;;  %2820 = vmatpush3.bf16.msra.mxu1 %v2819_v61  ;;  %v3352_v52 = vld [vmem:[%s2936_s20 + $0x198] sm:$0xff]  ;;  %v3366_v55 = vld [vmem:[%s2936_s20 + $0x1a8] sm:$0xff]  ;;  %v3374_v60 = vld [vmem:[%s2936_s20 + $0x1b0] sm:$0xff] }
  0x22   : > { %2821 = vmatprep.subr.bf16.mxu1 %v2843_v3  ;;  %v1059_v3 = vld [vmem:[%s4029_s2 + $0x70] sm:$0xff] }
  0x24   : > { %2277 = vmatpush3.msra.mxu0 %v267_v23  ;;  %v3275_v23 = vld [vmem:[%s2936_s20 + $0x140] sm:$0xff] }
  0x25   : > { %2279 = vmatmul.mubr.msk.f32.vlgmr.msra.gmra.mrb[0].mxu0 %vm268_vm1, %v2943_v24  ;;  %2823 = vmatpush3.bf16.msra.mxu1 %v2822_v1 }
  0x26   : > { %2281 = vmatprep.mubr.msk.f32.mxu0 %vm2844_vm0, %v2845_v6  ;;  %2543 = vmatprep.subr.mxu1 %v2845_v6 }
  0x29   : > { %2282 = vmatmul.mubr.msk.f32.gmra.mrb[2].mxu0 %vm268_vm1, %v2950_v25  ;;  %2544 = vmatpush3.msra.mxu1 %v1059_v3 }
  0x2a   : > { %2284 = vmatprep.mubr.msk.f32.mxu0 %vm2844_vm0, %v2845_v6 }
  0x2d   : > { %2285 = vmatmul.mubr.msk.f32.gmra.mrb[4].mxu0 %vm268_vm1, %v2957_v26 }
  0x2e   : > { %2287 = vmatprep.mubr.msk.f32.mxu0 %vm2844_vm0, %v2845_v6 }
  0x31   : > { %2288 = vmatmul.mubr.msk.f32.gmra.mrb[6].mxu0 %vm268_vm1, %v2964_v27 }
  0x32   : > { %2290 = vmatprep.mubr.msk.f32.mxu0 %vm2844_vm0, %v2845_v6 }
  0x35   : > { %2291 = vmatmul.mubr.msk.f32.gmra.mrb[8].mxu0 %vm268_vm1, %v2971_v28 }
  0x36   : > { %2293 = vmatprep.mubr.msk.f32.mxu0 %vm2844_vm0, %v2845_v6 }
  0x39   : > { %2294 = vmatmul.mubr.msk.f32.gmra.mrb[10].mxu0 %vm268_vm1, %v2978_v29 }
  0x3a   : > { %2296 = vmatprep.mubr.msk.f32.mxu0 %vm2844_vm0, %v2845_v6 }
  0x3d   : > { %2297 = vmatmul.mubr.msk.f32.gmra.mrb[12].mxu0 %vm268_vm1, %v2985_v30 }
  0x3e   : > { %2299 = vmatprep.mubr.msk.f32.mxu0 %vm2844_vm0, %v2845_v6 }
  0x41   : > { %2300 = vmatmul.mubr.msk.f32.gmra.mrb[14].mxu0 %vm268_vm1, %v2992_v31 }
  0x42   : > { %2302 = vmatprep.mubr.msk.f32.mxu0 %vm2844_vm0, %v2845_v6 }
  0x45   : > { %2303 = vmatmul.mubr.msk.f32.gmra.mrb[16].mxu0 %vm268_vm1, %v2999_v32 }
  0x46   : > { %2305 = vmatprep.mubr.msk.f32.mxu0 %vm2844_vm0, %v2845_v6 }
  0x49   : > { %2306 = vmatmul.mubr.msk.f32.gmra.mrb[18].mxu0 %vm268_vm1, %v3006_v33 }
  0x4a   : > { %2308 = vmatprep.mubr.msk.f32.mxu0 %vm2844_vm0, %v2845_v6 }
  0x4d   : > { %2309 = vmatmul.mubr.msk.f32.gmra.mrb[20].mxu0 %vm268_vm1, %v3013_v34 }
  0x4e   : > { %2311 = vmatprep.mubr.msk.f32.mxu0 %vm2844_vm0, %v2845_v6 }
  0x51   : > { %2312 = vmatmul.mubr.msk.f32.gmra.mrb[22].mxu0 %vm268_vm1, %v3020_v35 }
  0x52   : > { %2314 = vmatprep.mubr.msk.f32.mxu0 %vm2844_vm0, %v2845_v6 }
  0x55   : > { %2315 = vmatmul.mubr.msk.f32.gmra.mrb[24].mxu0 %vm268_vm1, %v3027_v36 }
  0x56   : > { %2317 = vmatprep.mubr.msk.f32.mxu0 %vm2844_vm0, %v2845_v6 }
  0x59   : > { %2318 = vmatmul.mubr.msk.f32.gmra.mrb[26].mxu0 %vm268_vm1, %v3034_v37 }
  0x5a   : > { %2320 = vmatprep.mubr.msk.f32.mxu0 %vm2844_vm0, %v2845_v6 }
  0x5d   : > { %2321 = vmatmul.mubr.msk.f32.gmra.mrb[28].mxu0 %vm268_vm1, %v3041_v38 }
  0x5e   : > { %2323 = vmatprep.mubr.msk.f32.mxu0 %vm2844_vm0, %v2845_v6 }
  0x61   : > { %2324 = vmatmul.mubr.msk.f32.gmra.mrb[30].mxu0 %vm268_vm1, %v3054_v42 }
  0x62   : > { %2326 = vmatprep.mubr.msk.f32.mxu0 %vm2844_vm0, %v2845_v6 }
  0x65   : > { %2327 = vmatmul.mubr.msk.f32.gmra.mrb[32].mxu0 %vm268_vm1, %v3068_v46 }
  0x66   : > { %2329 = vmatprep.mubr.msk.f32.mxu0 %vm2844_vm0, %v2845_v6 }
  0x69   : > { %2330 = vmatmul.mubr.msk.f32.gmra.mrb[34].mxu0 %vm268_vm1, %v3082_v50 }
  0x6a   : > { %2332 = vmatprep.mubr.msk.f32.mxu0 %vm2844_vm0, %v2845_v6 }
  0x6d   : > { %2333 = vmatmul.mubr.msk.f32.gmra.mrb[36].mxu0 %vm268_vm1, %v3096_v54 }
  0x6e   : > { %2335 = vmatprep.mubr.msk.f32.mxu0 %vm2844_vm0, %v2845_v6 }
  0x71   : > { %2336 = vmatmul.mubr.msk.f32.gmra.mrb[38].mxu0 %vm268_vm1, %v3110_v58 }
  0x72   : > { %2338 = vmatprep.mubr.msk.f32.mxu0 %vm2844_vm0, %v2845_v6 }
  0x75   : > { %2339 = vmatmul.mubr.msk.f32.gmra.mrb[40].mxu0 %vm268_vm1, %v3124_v62 }
  0x76   : > { %2341 = vmatprep.mubr.msk.f32.mxu0 %vm2844_vm0, %v2845_v6 }
  0x79   : > { %2342 = vmatmul.mubr.msk.f32.gmra.mrb[42].mxu0 %vm268_vm1, %v3138_v2 }
  0x7a   : > { %2344 = vmatprep.mubr.msk.f32.mxu0 %vm2844_vm0, %v2845_v6 }
  0x7d   : > { %2345 = vmatmul.mubr.msk.f32.gmra.mrb[44].mxu0 %vm268_vm1, %v3149_v4 }
  0x7e   : > { %2347 = vmatprep.mubr.msk.f32.mxu0 %vm2844_vm0, %v2845_v6 }
  0x81   : > { %2348 = vmatmul.mubr.msk.f32.gmra.mrb[46].mxu0 %vm268_vm1, %v3156_v5 }
  0x82   : > { %2350 = vmatprep.mubr.msk.f32.mxu0 %vm2844_vm0, %v2845_v6 }
  0x85   : > { %2351 = vmatmul.mubr.msk.f32.gmra.mrb[48].mxu0 %vm268_vm1, %v3163_v7 }
  0x86   : > { %2353 = vmatprep.mubr.msk.f32.mxu0 %vm2844_vm0, %v2845_v6 }
  0x89   : > { %2354 = vmatmul.mubr.msk.f32.gmra.mrb[50].mxu0 %vm268_vm1, %v3170_v8 }
  0x8a   : > { %2356 = vmatprep.mubr.msk.f32.mxu0 %vm2844_vm0, %v2845_v6 }
  0x8d   : > { %2357 = vmatmul.mubr.msk.f32.gmra.mrb[52].mxu0 %vm268_vm1, %v3177_v9 }
  0x8e   : > { %2359 = vmatprep.mubr.msk.f32.mxu0 %vm2844_vm0, %v2845_v6 }
  0x91   : > { %2360 = vmatmul.mubr.msk.f32.gmra.mrb[54].mxu0 %vm268_vm1, %v3184_v10 }
  0x92   : > { %2362 = vmatprep.mubr.msk.f32.mxu0 %vm2844_vm0, %v2845_v6 }
  0x95   : > { %2363 = vmatmul.mubr.msk.f32.gmra.mrb[56].mxu0 %vm268_vm1, %v3191_v11 }
  0x96   : > { %2365 = vmatprep.mubr.msk.f32.mxu0 %vm2844_vm0, %v2845_v6 }
  0x99   : > { %2366 = vmatmul.mubr.msk.f32.gmra.mrb[58].mxu0 %vm268_vm1, %v3198_v12 }
  0x9a   : > { %2368 = vmatprep.mubr.msk.f32.mxu0 %vm2844_vm0, %v2845_v6 }
  0x9d   : > { %2369 = vmatmul.mubr.msk.f32.gmra.mrb[60].mxu0 %vm268_vm1, %v3205_v13 }
  0x9e   : > { %2371 = vmatprep.mubr.msk.f32.mxu0 %vm2844_vm0, %v2845_v6 }
  0xa1   : > { %2372 = vmatmul.mubr.msk.f32.gmra.mrb[62].mxu0 %vm268_vm1, %v3212_v14 }
  0xa2   : > { %2374 = vmatprep.mubr.msk.f32.mxu0 %vm2844_vm0, %v2845_v6 }
  0xa5   : > { %2375 = vmatmul.mubr.msk.f32.gmra.mrb[64].mxu0 %vm268_vm1, %v3219_v15 }
  0xa6   : > { %2377 = vmatprep.mubr.msk.f32.mxu0 %vm2844_vm0, %v2845_v6 }
  0xa9   : > { %2378 = vmatmul.mubr.msk.f32.gmra.mrb[66].mxu0 %vm268_vm1, %v3226_v16 }
  0xaa   : > { %2380 = vmatprep.mubr.msk.f32.mxu0 %vm2844_vm0, %v2845_v6 }
  0xad   : > { %2381 = vmatmul.mubr.msk.f32.gmra.mrb[68].mxu0 %vm268_vm1, %v3233_v17 }
  0xae   : > { %2383 = vmatprep.mubr.msk.f32.mxu0 %vm2844_vm0, %v2845_v6 }
  0xb1   : > { %2384 = vmatmul.mubr.msk.f32.gmra.mrb[70].mxu0 %vm268_vm1, %v3240_v18 }
  0xb2   : > { %2386 = vmatprep.mubr.msk.f32.mxu0 %vm2844_vm0, %v2845_v6 }
  0xb5   : > { %2387 = vmatmul.mubr.msk.f32.gmra.mrb[72].mxu0 %vm268_vm1, %v3247_v19 }
  0xb6   : > { %2389 = vmatprep.mubr.msk.f32.mxu0 %vm2844_vm0, %v2845_v6 }
  0xb9   : > { %2390 = vmatmul.mubr.msk.f32.gmra.mrb[74].mxu0 %vm268_vm1, %v3254_v20 }
  0xba   : > { %2392 = vmatprep.mubr.msk.f32.mxu0 %vm2844_vm0, %v2845_v6 }
  0xbd   : > { %2393 = vmatmul.mubr.msk.f32.gmra.mrb[76].mxu0 %vm268_vm1, %v3261_v21 }
  0xbe   : > { %2395 = vmatprep.mubr.msk.f32.mxu0 %vm2844_vm0, %v2845_v6 }
  0xc1   : > { %2396 = vmatmul.mubr.msk.f32.gmra.mrb[78].mxu0 %vm268_vm1, %v3268_v22 }
  0xc2   : > { %2398 = vmatprep.mubr.msk.f32.mxu0 %vm2844_vm0, %v2845_v6 }
  0xc5   : > { %2399 = vmatmul.mubr.msk.f32.gmra.mrb[80].mxu0 %vm268_vm1, %v3275_v23 }
  0xc6   : > { %2401 = vmatprep.mubr.msk.f32.mxu0 %vm2844_vm0, %v2845_v6 }
  0xc9   : > { %2402 = vmatmul.mubr.msk.f32.gmra.mrb[82].mxu0 %vm268_vm1, %v3282_v39 }
  0xca   : > { %2404 = vmatprep.mubr.msk.f32.mxu0 %vm2844_vm0, %v2845_v6 }
  0xcd   : > { %2405 = vmatmul.mubr.msk.f32.gmra.mrb[84].mxu0 %vm268_vm1, %v3289_v40 }
  0xce   : > { %2407 = vmatprep.mubr.msk.f32.mxu0 %vm2844_vm0, %v2845_v6 }
  0xd1   : > { %2408 = vmatmul.mubr.msk.f32.gmra.mrb[86].mxu0 %vm268_vm1, %v3296_v41 }
  0xd2   : > { %2410 = vmatprep.mubr.msk.f32.mxu0 %vm2844_vm0, %v2845_v6 }
  0xd5   : > { %2411 = vmatmul.mubr.msk.f32.gmra.mrb[88].mxu0 %vm268_vm1, %v3303_v43 }
  0xd6   : > { %2413 = vmatprep.mubr.msk.f32.mxu0 %vm2844_vm0, %v2845_v6 }
  0xd9   : > { %2414 = vmatmul.mubr.msk.f32.gmra.mrb[90].mxu0 %vm268_vm1, %v3310_v44 }
  0xda   : > { %2416 = vmatprep.mubr.msk.f32.mxu0 %vm2844_vm0, %v2845_v6 }
  0xdd   : > { %2417 = vmatmul.mubr.msk.f32.gmra.mrb[92].mxu0 %vm268_vm1, %v3317_v45 }
  0xde   : > { %2419 = vmatprep.mubr.msk.f32.mxu0 %vm2844_vm0, %v2845_v6 }
  0xe1   : > { %2420 = vmatmul.mubr.msk.f32.gmra.mrb[94].mxu0 %vm268_vm1, %v3324_v47 }
  0xe2   : > { %2422 = vmatprep.mubr.msk.f32.mxu0 %vm2844_vm0, %v2845_v6 }
  0xe5   : > { %2423 = vmatmul.mubr.msk.f32.gmra.mrb[96].mxu0 %vm268_vm1, %v3331_v48 }
  0xe6   : > { %2425 = vmatprep.mubr.msk.f32.mxu0 %vm2844_vm0, %v2845_v6 }
  0xe9   : > { %2426 = vmatmul.mubr.msk.f32.gmra.mrb[98].mxu0 %vm268_vm1, %v3338_v49 }
  0xea   : > { %2428 = vmatprep.mubr.msk.f32.mxu0 %vm2844_vm0, %v2845_v6 }
  0xed   : > { %2429 = vmatmul.mubr.msk.f32.gmra.mrb[100].mxu0 %vm268_vm1, %v3345_v51 }
  0xee   : > { %2431 = vmatprep.mubr.msk.f32.mxu0 %vm2844_vm0, %v2845_v6 }
  0xf1   : > { %2432 = vmatmul.mubr.msk.f32.gmra.mrb[102].mxu0 %vm268_vm1, %v3352_v52 }
  0xf2   : > { %2434 = vmatprep.mubr.msk.f32.mxu0 %vm2844_vm0, %v2845_v6 }
  0xf5   : > { %2435 = vmatmul.mubr.msk.f32.gmra.mrb[104].mxu0 %vm268_vm1, %v3359_v53 }
  0xf6   : > { %2437 = vmatprep.mubr.msk.f32.mxu0 %vm2844_vm0, %v2845_v6 }
  0xf8   : > { %v572_v56 = vpop.f32.mrb[0].mxu0 }
  0xf9   : > { %v966_v57 = vmul.f32 %v572_v56, %v2943_v24  ;;  %v2280_v59 = vpop.f32.mrb[1].mxu0  ;;  %2438 = vmatmul.mubr.msk.f32.gmra.mrb[106].mxu0 %vm268_vm1, %v3366_v55  ;;  %v3385_v24 = vld [vmem:[%s2936_s20 + $0x1b8] sm:$0xff] }
  0xfa   : > { %2440 = vmatprep.mubr.msk.f32.mxu0 %vm2844_vm0, %v2845_v6 }
  0xfb   : > { %2546 = vmatmul.mubr.msk.f32.vlgmr.msra.gmra.mrb[0].mxu1 %vm268_vm1, %v966_v57 }
  0xfc   : > { %v577_v61 = vpop.f32.mrb[2].mxu0  ;;  %2548 = vmatprep.mubr.msk.f32.mxu1 %vm2844_vm0, %v2845_v6 }
  0xfd   : > { %v967_v63 = vmul.f32 %v577_v61, %v2950_v25  ;;  %v2283_v0 = vpop.f32.mrb[3].mxu0  ;;  %2441 = vmatmul.mubr.msk.f32.gmra.mrb[108].mxu0 %vm268_vm1, %v3374_v60  ;;  %v3396_v25 = vld [vmem:[%s2936_s20 + $0x1c0] sm:$0xff] }
  0xfe   : > { %2443 = vmatprep.mubr.msk.f32.mxu0 %vm2844_vm0, %v2845_v6 }
  0xff   : > { %2549 = vmatmul.mubr.msk.f32.gmra.mrb[2].mxu1 %vm268_vm1, %v967_v63 }
 0x100   : > { %v582_v1 = vpop.f32.mrb[4].mxu0  ;;  %2551 = vmatprep.mubr.msk.f32.mxu1 %vm2844_vm0, %v2845_v6 }
 0x101   : > { %v968_v3 = vmul.f32 %v582_v1, %v2957_v26  ;;  %v2286_v56 = vpop.f32.mrb[5].mxu0  ;;  %2444 = vmatmul.mubr.msk.f32.gmra.mrb[110].mxu0 %vm268_vm1, %v3385_v24  ;;  %v3407_v26 = vld [vmem:[%s2936_s20 + $0x1c8] sm:$0xff] }
 0x102   : > { %2446 = vmatprep.mubr.msk.f32.mxu0 %vm2844_vm0, %v2845_v6 }
 0x103   : > { %2552 = vmatmul.mubr.msk.f32.gmra.mrb[4].mxu1 %vm268_vm1, %v968_v3 }
 0x104   : > { %v587_v57 = vpop.f32.mrb[6].mxu0  ;;  %2554 = vmatprep.mubr.msk.f32.mxu1 %vm2844_vm0, %v2845_v6 }
 0x105   : > { %v969_v59 = vmul.f32 %v587_v57, %v2964_v27  ;;  %v2289_v61 = vpop.f32.mrb[7].mxu0  ;;  %2447 = vmatmul.mubr.msk.f32.gmra.mrb[112].mxu0 %vm268_vm1, %v3396_v25  ;;  %v3418_v27 = vld [vmem:[%s2936_s20 + $0x1d0] sm:$0xff] }
 0x106   : > { %2449 = vmatprep.mubr.msk.f32.mxu0 %vm2844_vm0, %v2845_v6 }
 0x107   : > { %2555 = vmatmul.mubr.msk.f32.gmra.mrb[6].mxu1 %vm268_vm1, %v969_v59 }
 0x108   : > { %v592_v63 = vpop.f32.mrb[8].mxu0  ;;  %2557 = vmatprep.mubr.msk.f32.mxu1 %vm2844_vm0, %v2845_v6 }
 0x109   : > { %v970_v0 = vmul.f32 %v592_v63, %v2971_v28  ;;  %v2292_v1 = vpop.f32.mrb[9].mxu0  ;;  %2450 = vmatmul.mubr.msk.f32.gmra.mrb[114].mxu0 %vm268_vm1, %v3407_v26  ;;  %v3429_v28 = vld [vmem:[%s2936_s20 + $0x1d8] sm:$0xff] }
 0x10a   : > { %2452 = vmatprep.mubr.msk.f32.mxu0 %vm2844_vm0, %v2845_v6 }
 0x10b   : > { %2558 = vmatmul.mubr.msk.f32.gmra.mrb[8].mxu1 %vm268_vm1, %v970_v0 }
 0x10c   : > { %v597_v3 = vpop.f32.mrb[10].mxu0  ;;  %2560 = vmatprep.mubr.msk.f32.mxu1 %vm2844_vm0, %v2845_v6 }
 0x10d   : > { %v971_v56 = vmul.f32 %v597_v3, %v2978_v29  ;;  %v2295_v57 = vpop.f32.mrb[11].mxu0  ;;  %2453 = vmatmul.mubr.msk.f32.gmra.mrb[116].mxu0 %vm268_vm1, %v3418_v27  ;;  %v3440_v29 = vld [vmem:[%s2936_s20 + $0x1e0] sm:$0xff] }
 0x10e   : > { %2455 = vmatprep.mubr.msk.f32.mxu0 %vm2844_vm0, %v2845_v6 }
 0x10f   : > { %2561 = vmatmul.mubr.msk.f32.gmra.mrb[10].mxu1 %vm268_vm1, %v971_v56 }
 0x110   : > { %v602_v59 = vpop.f32.mrb[12].mxu0  ;;  %2563 = vmatprep.mubr.msk.f32.mxu1 %vm2844_vm0, %v2845_v6 }
 0x111   : > { %v972_v61 = vmul.f32 %v602_v59, %v2985_v30  ;;  %v2298_v63 = vpop.f32.mrb[13].mxu0  ;;  %2456 = vmatmul.mubr.msk.f32.gmra.mrb[118].mxu0 %vm268_vm1, %v3429_v28  ;;  %v3451_v30 = vld [vmem:[%s2936_s20 + $0x1e8] sm:$0xff] }
 0x112   : > { %2458 = vmatprep.mubr.msk.f32.mxu0 %vm2844_vm0, %v2845_v6 }
 0x113   : > { %2564 = vmatmul.mubr.msk.f32.gmra.mrb[12].mxu1 %vm268_vm1, %v972_v61 }
 0x114   : > { %v607_v0 = vpop.f32.mrb[14].mxu0  ;;  %2566 = vmatprep.mubr.msk.f32.mxu1 %vm2844_vm0, %v2845_v6 }
 0x115   : > { %v973_v1 = vmul.f32 %v607_v0, %v2992_v31  ;;  %v2301_v3 = vpop.f32.mrb[15].mxu0  ;;  %2459 = vmatmul.mubr.msk.f32.gmra.mrb[120].mxu0 %vm268_vm1, %v3440_v29  ;;  %v3462_v31 = vld [vmem:[%s2936_s20 + $0x1f0] sm:$0xff] }
 0x116   : > { %2461 = vmatprep.mubr.msk.f32.mxu0 %vm2844_vm0, %v2845_v6 }
 0x117   : > { %2567 = vmatmul.mubr.msk.f32.gmra.mrb[14].mxu1 %vm268_vm1, %v973_v1 }
 0x118   : > { %v612_v56 = vpop.f32.mrb[16].mxu0  ;;  %2569 = vmatprep.mubr.msk.f32.mxu1 %vm2844_vm0, %v2845_v6 }
 0x119   : > { %v974_v57 = vmul.f32 %v612_v56, %v2999_v32  ;;  %v2304_v59 = vpop.f32.mrb[17].mxu0  ;;  %2462 = vmatmul.mubr.msk.f32.gmra.mrb[122].mxu0 %vm268_vm1, %v3451_v30  ;;  %v3473_v32 = vld [vmem:[%s2936_s20 + $0x1f8] sm:$0xff] }
 0x11a   : > { %2464 = vmatprep.mubr.msk.f32.mxu0 %vm2844_vm0, %v2845_v6 }
 0x11b   : > { %2570 = vmatmul.mubr.msk.f32.gmra.mrb[16].mxu1 %vm268_vm1, %v974_v57 }
 0x11c   : > { %v617_v61 = vpop.f32.mrb[18].mxu0  ;;  %2572 = vmatprep.mubr.msk.f32.mxu1 %vm2844_vm0, %v2845_v6 }
 0x11d   : > { %v975_v63 = vmul.f32 %v617_v61, %v3006_v33  ;;  %v2307_v0 = vpop.f32.mrb[19].mxu0  ;;  %2465 = vmatmul.mubr.msk.f32.gmra.mrb[124].mxu0 %vm268_vm1, %v3462_v31  ;;  %v3484_v33 = vld [vmem:[%s2936_s20 + $0x200] sm:$0xff] }
 0x11e   : > { %2467 = vmatprep.mubr.msk.f32.mxu0 %vm2844_vm0, %v2845_v6 }
 0x11f   : > { %2573 = vmatmul.mubr.msk.f32.gmra.mrb[18].mxu1 %vm268_vm1, %v975_v63 }
 0x120   : > { %v622_v1 = vpop.f32.mrb[20].mxu0  ;;  %2575 = vmatprep.mubr.msk.f32.mxu1 %vm2844_vm0, %v2845_v6 }
 0x121   : > { %v976_v3 = vmul.f32 %v622_v1, %v3013_v34  ;;  %v2310_v56 = vpop.f32.mrb[21].mxu0  ;;  %2468 = vmatmul.mubr.msk.f32.gmra.mrb[126].mxu0 %vm268_vm1, %v3473_v32  ;;  %v3495_v34 = vld [vmem:[%s2936_s20 + $0x208] sm:$0xff] }
 0x122   : > { %2470 = vmatprep.mubr.msk.f32.mxu0 %vm2844_vm0, %v2845_v6 }
 0x123   : > { %2576 = vmatmul.mubr.msk.f32.gmra.mrb[20].mxu1 %vm268_vm1, %v976_v3 }
 0x124   : > { %v627_v57 = vpop.f32.mrb[22].mxu0  ;;  %2578 = vmatprep.mubr.msk.f32.mxu1 %vm2844_vm0, %v2845_v6 }
 0x125   : > { %v977_v59 = vmul.f32 %v627_v57, %v3020_v35  ;;  %v2313_v61 = vpop.f32.mrb[23].mxu0  ;;  %2471 = vmatmul.mubr.msk.f32.gmra.mrb[128].mxu0 %vm268_vm1, %v3484_v33  ;;  %v3506_v35 = vld [vmem:[%s2936_s20 + $0x210] sm:$0xff] }
 0x126   : > { %2473 = vmatprep.mubr.msk.f32.mxu0 %vm2844_vm0, %v2845_v6 }
 0x127   : > { %2579 = vmatmul.mubr.msk.f32.gmra.mrb[22].mxu1 %vm268_vm1, %v977_v59 }
 0x128   : > { %v632_v63 = vpop.f32.mrb[24].mxu0  ;;  %2581 = vmatprep.mubr.msk.f32.mxu1 %vm2844_vm0, %v2845_v6 }
 0x129   : > { %v978_v0 = vmul.f32 %v632_v63, %v3027_v36  ;;  %v2316_v1 = vpop.f32.mrb[25].mxu0  ;;  %2474 = vmatmul.mubr.msk.f32.gmra.mrb[130].mxu0 %vm268_vm1, %v3495_v34  ;;  %v3517_v36 = vld [vmem:[%s2936_s20 + $0x218] sm:$0xff] }
 0x12a   : > { %2476 = vmatprep.mubr.msk.f32.mxu0 %vm2844_vm0, %v2845_v6 }
 0x12b   : > { %2582 = vmatmul.mubr.msk.f32.gmra.mrb[24].mxu1 %vm268_vm1, %v978_v0 }
 0x12c   : > { %v637_v3 = vpop.f32.mrb[26].mxu0  ;;  %2584 = vmatprep.mubr.msk.f32.mxu1 %vm2844_vm0, %v2845_v6 }
 0x12d   : > { %v979_v56 = vmul.f32 %v637_v3, %v3034_v37  ;;  %v2319_v57 = vpop.f32.mrb[27].mxu0  ;;  %2477 = vmatmul.mubr.msk.f32.gmra.mrb[132].mxu0 %vm268_vm1, %v3506_v35  ;;  %v3528_v37 = vld [vmem:[%s2936_s20 + $0x220] sm:$0xff] }
 0x12e   : > { %2479 = vmatprep.mubr.msk.f32.mxu0 %vm2844_vm0, %v2845_v6 }
 0x12f   : > { %2585 = vmatmul.mubr.msk.f32.gmra.mrb[26].mxu1 %vm268_vm1, %v979_v56 }
 0x130   : > { %v642_v59 = vpop.f32.mrb[28].mxu0  ;;  %2587 = vmatprep.mubr.msk.f32.mxu1 %vm2844_vm0, %v2845_v6 }
 0x131   : > { %v980_v61 = vmul.f32 %v642_v59, %v3041_v38  ;;  %v2322_v63 = vpop.f32.mrb[29].mxu0  ;;  %2480 = vmatmul.mubr.msk.f32.gmra.mrb[134].mxu0 %vm268_vm1, %v3517_v36  ;;  %v3539_v38 = vld [vmem:[%s2936_s20 + $0x228] sm:$0xff] }
 0x132   : > { %2482 = vmatprep.mubr.msk.f32.mxu0 %vm2844_vm0, %v2845_v6 }
 0x133   : > { %2588 = vmatmul.mubr.msk.f32.gmra.mrb[28].mxu1 %vm268_vm1, %v980_v61 }
 0x134   : > { %v647_v0 = vpop.f32.mrb[30].mxu0  ;;  %2590 = vmatprep.mubr.msk.f32.mxu1 %vm2844_vm0, %v2845_v6 }
 0x135   : > { %v981_v1 = vmul.f32 %v647_v0, %v3054_v42  ;;  %v2325_v3 = vpop.f32.mrb[31].mxu0  ;;  %2483 = vmatmul.mubr.msk.f32.gmra.mrb[136].mxu0 %vm268_vm1, %v3528_v37  ;;  %v3550_v42 = vld [vmem:[%s2936_s20 + $0x230] sm:$0xff] }
 0x136   : > { %2485 = vmatprep.mubr.msk.f32.mxu0 %vm2844_vm0, %v2845_v6 }
 0x137   : > { %2591 = vmatmul.mubr.msk.f32.gmra.mrb[30].mxu1 %vm268_vm1, %v981_v1 }
 0x138   : > { %v652_v56 = vpop.f32.mrb[32].mxu0  ;;  %2593 = vmatprep.mubr.msk.f32.mxu1 %vm2844_vm0, %v2845_v6 }
 0x139   : > { %v982_v57 = vmul.f32 %v652_v56, %v3068_v46  ;;  %v2328_v59 = vpop.f32.mrb[33].mxu0  ;;  %2486 = vmatmul.mubr.msk.f32.gmra.mrb[138].mxu0 %vm268_vm1, %v3539_v38  ;;  %v3561_v46 = vld [vmem:[%s2936_s20 + $0x238] sm:$0xff] }
 0x13a   : > { %2488 = vmatprep.mubr.msk.f32.mxu0 %vm2844_vm0, %v2845_v6 }
 0x13b   : > { %2594 = vmatmul.mubr.msk.f32.gmra.mrb[32].mxu1 %vm268_vm1, %v982_v57 }
 0x13c   : > { %v657_v61 = vpop.f32.mrb[34].mxu0  ;;  %2596 = vmatprep.mubr.msk.f32.mxu1 %vm2844_vm0, %v2845_v6 }
 0x13d   : > { %v983_v63 = vmul.f32 %v657_v61, %v3082_v50  ;;  %v2331_v0 = vpop.f32.mrb[35].mxu0  ;;  %2489 = vmatmul.mubr.msk.f32.gmra.mrb[140].mxu0 %vm268_vm1, %v3550_v42  ;;  %v3572_v50 = vld [vmem:[%s2936_s20 + $0x240] sm:$0xff] }
 0x13e   : > { %2491 = vmatprep.mubr.msk.f32.mxu0 %vm2844_vm0, %v2845_v6 }
 0x13f   : > { %2597 = vmatmul.mubr.msk.f32.gmra.mrb[34].mxu1 %vm268_vm1, %v983_v63 }
 0x140   : > { %v662_v1 = vpop.f32.mrb[36].mxu0  ;;  %2599 = vmatprep.mubr.msk.f32.mxu1 %vm2844_vm0, %v2845_v6 }
 0x141   : > { %v984_v3 = vmul.f32 %v662_v1, %v3096_v54  ;;  %v2334_v56 = vpop.f32.mrb[37].mxu0  ;;  %2492 = vmatmul.mubr.msk.f32.gmra.mrb[142].mxu0 %vm268_vm1, %v3561_v46  ;;  %v3583_v54 = vld [vmem:[%s2936_s20 + $0x248] sm:$0xff] }
 0x142   : > { %2494 = vmatprep.mubr.msk.f32.mxu0 %vm2844_vm0, %v2845_v6 }
 0x143   : > { %2600 = vmatmul.mubr.msk.f32.gmra.mrb[36].mxu1 %vm268_vm1, %v984_v3 }
 0x144   : > { %v667_v57 = vpop.f32.mrb[38].mxu0  ;;  %2602 = vmatprep.mubr.msk.f32.mxu1 %vm2844_vm0, %v2845_v6 }
 0x145   : > { %v985_v59 = vmul.f32 %v667_v57, %v3110_v58  ;;  %v2337_v61 = vpop.f32.mrb[39].mxu0  ;;  %2495 = vmatmul.mubr.msk.f32.gmra.mrb[144].mxu0 %vm268_vm1, %v3572_v50  ;;  %v3594_v58 = vld [vmem:[%s2936_s20 + $0x250] sm:$0xff] }
 0x146   : > { %2497 = vmatprep.mubr.msk.f32.mxu0 %vm2844_vm0, %v2845_v6 }
 0x147   : > { %2603 = vmatmul.mubr.msk.f32.gmra.mrb[38].mxu1 %vm268_vm1, %v985_v59 }
 0x148   : > { %v672_v63 = vpop.f32.mrb[40].mxu0  ;;  %2605 = vmatprep.mubr.msk.f32.mxu1 %vm2844_vm0, %v2845_v6 }
 0x149   : > { %v986_v0 = vmul.f32 %v672_v63, %v3124_v62  ;;  %v2340_v1 = vpop.f32.mrb[41].mxu0  ;;  %2498 = vmatmul.mubr.msk.f32.gmra.mrb[146].mxu0 %vm268_vm1, %v3583_v54  ;;  %v3605_v62 = vld [vmem:[%s2936_s20 + $0x258] sm:$0xff] }
 0x14a   : > { %2500 = vmatprep.mubr.msk.f32.mxu0 %vm2844_vm0, %v2845_v6 }
 0x14b   : > { %2606 = vmatmul.mubr.msk.f32.gmra.mrb[40].mxu1 %vm268_vm1, %v986_v0 }
 0x14c   : > { %v677_v3 = vpop.f32.mrb[42].mxu0  ;;  %2608 = vmatprep.mubr.msk.f32.mxu1 %vm2844_vm0, %v2845_v6 }
 0x14d   : > { %v987_v56 = vmul.f32 %v677_v3, %v3138_v2  ;;  %v2343_v57 = vpop.f32.mrb[43].mxu0  ;;  %2501 = vmatmul.mubr.msk.f32.gmra.mrb[148].mxu0 %vm268_vm1, %v3594_v58  ;;  %v3616_v2 = vld [vmem:[%s2936_s20 + $0x260] sm:$0xff] }
 0x14e   : > { %2503 = vmatprep.mubr.msk.f32.mxu0 %vm2844_vm0, %v2845_v6 }
 0x14f   : > { %2609 = vmatmul.mubr.msk.f32.gmra.mrb[42].mxu1 %vm268_vm1, %v987_v56 }
 0x150   : > { %v682_v59 = vpop.f32.mrb[44].mxu0  ;;  %2611 = vmatprep.mubr.msk.f32.mxu1 %vm2844_vm0, %v2845_v6 }
 0x151   : > { %v988_v61 = vmul.f32 %v682_v59, %v3149_v4  ;;  %v2346_v63 = vpop.f32.mrb[45].mxu0  ;;  %2504 = vmatmul.mubr.msk.f32.gmra.mrb[150].mxu0 %vm268_vm1, %v3605_v62  ;;  %v3627_v4 = vld [vmem:[%s2936_s20 + $0x268] sm:$0xff] }
 0x152   : > { %2506 = vmatprep.mubr.msk.f32.mxu0 %vm2844_vm0, %v2845_v6 }
 0x153   : > { %2612 = vmatmul.mubr.msk.f32.gmra.mrb[44].mxu1 %vm268_vm1, %v988_v61 }
 0x154   : > { %v687_v0 = vpop.f32.mrb[46].mxu0  ;;  %2614 = vmatprep.mubr.msk.f32.mxu1 %vm2844_vm0, %v2845_v6 }
 0x155   : > { %v989_v1 = vmul.f32 %v687_v0, %v3156_v5  ;;  %v2349_v3 = vpop.f32.mrb[47].mxu0  ;;  %2507 = vmatmul.mubr.msk.f32.gmra.mrb[152].mxu0 %vm268_vm1, %v3616_v2  ;;  %v3638_v5 = vld [vmem:[%s2936_s20 + $0x270] sm:$0xff] }
 0x156   : > { %2509 = vmatprep.mubr.msk.f32.mxu0 %vm2844_vm0, %v2845_v6 }
 0x157   : > { %2615 = vmatmul.mubr.msk.f32.gmra.mrb[46].mxu1 %vm268_vm1, %v989_v1 }
 0x158   : > { %v692_v56 = vpop.f32.mrb[48].mxu0  ;;  %2617 = vmatprep.mubr.msk.f32.mxu1 %vm2844_vm0, %v2845_v6 }
 0x159   : > { %v990_v57 = vmul.f32 %v692_v56, %v3163_v7  ;;  %v2352_v59 = vpop.f32.mrb[49].mxu0  ;;  %2510 = vmatmul.mubr.msk.f32.gmra.mrb[154].mxu0 %vm268_vm1, %v3627_v4 }
 0x15a   : > { %2512 = vmatprep.mubr.msk.f32.mxu0 %vm2844_vm0, %v2845_v6 }
 0x15b   : > { %2618 = vmatmul.mubr.msk.f32.gmra.mrb[48].mxu1 %vm268_vm1, %v990_v57 }
 0x15c   : > { %v697_v61 = vpop.f32.mrb[50].mxu0  ;;  %2620 = vmatprep.mubr.msk.f32.mxu1 %vm2844_vm0, %v2845_v6 }
 0x15d   : > { %v991_v63 = vmul.f32 %v697_v61, %v3170_v8  ;;  %v2355_v0 = vpop.f32.mrb[51].mxu0  ;;  %2513 = vmatmul.mubr.msk.f32.gmra.mrb[156].mxu0 %vm268_vm1, %v3638_v5 }
 0x15f   : > { %2621 = vmatmul.mubr.msk.f32.gmra.mrb[50].mxu1 %vm268_vm1, %v991_v63 }
 0x160   : > { %v702_v7 = vpop.f32.mrb[52].mxu0  ;;  %2623 = vmatprep.mubr.msk.f32.mxu1 %vm2844_vm0, %v2845_v6 }
 0x161   : > { %v992_v1 = vmul.f32 %v702_v7, %v3177_v9  ;;  %v2358_v3 = vpop.f32.mrb[53].mxu0 }
 0x163   : > { %2624 = vmatmul.mubr.msk.f32.gmra.mrb[52].mxu1 %vm268_vm1, %v992_v1 }
 0x164   : > { %v707_v56 = vpop.f32.mrb[54].mxu0  ;;  %2626 = vmatprep.mubr.msk.f32.mxu1 %vm2844_vm0, %v2845_v6 }
 0x165   : > { %v993_v8 = vmul.f32 %v707_v56, %v3184_v10  ;;  %v2361_v57 = vpop.f32.mrb[55].mxu0 }
 0x167   : > { %2627 = vmatmul.mubr.msk.f32.gmra.mrb[54].mxu1 %vm268_vm1, %v993_v8 }
 0x168   : > { %v712_v59 = vpop.f32.mrb[56].mxu0  ;;  %2629 = vmatprep.mubr.msk.f32.mxu1 %vm2844_vm0, %v2845_v6 }
 0x169   : > { %v994_v61 = vmul.f32 %v712_v59, %v3191_v11  ;;  %v2364_v63 = vpop.f32.mrb[57].mxu0 }
 0x16b   : > { %2630 = vmatmul.mubr.msk.f32.gmra.mrb[56].mxu1 %vm268_vm1, %v994_v61 }
 0x16c   : > { %v717_v9 = vpop.f32.mrb[58].mxu0  ;;  %2632 = vmatprep.mubr.msk.f32.mxu1 %vm2844_vm0, %v2845_v6 }
 0x16d   : > { %v995_v0 = vmul.f32 %v717_v9, %v3198_v12  ;;  %v2367_v7 = vpop.f32.mrb[59].mxu0 }
 0x16f   : > { %2633 = vmatmul.mubr.msk.f32.gmra.mrb[58].mxu1 %vm268_vm1, %v995_v0 }
 0x170   : > { %v722_v10 = vpop.f32.mrb[60].mxu0  ;;  %2635 = vmatprep.mubr.msk.f32.mxu1 %vm2844_vm0, %v2845_v6 }
 0x171   : > { %v996_v1 = vmul.f32 %v722_v10, %v3205_v13  ;;  %v2370_v3 = vpop.f32.mrb[61].mxu0 }
 0x173   : > { %2636 = vmatmul.mubr.msk.f32.gmra.mrb[60].mxu1 %vm268_vm1, %v996_v1 }
 0x174   : > { %v727_v11 = vpop.f32.mrb[62].mxu0  ;;  %2638 = vmatprep.mubr.msk.f32.mxu1 %vm2844_vm0, %v2845_v6 }
 0x175   : > { %v997_v56 = vmul.f32 %v727_v11, %v3212_v14  ;;  %v2373_v8 = vpop.f32.mrb[63].mxu0 }
 0x177   : > { %2639 = vmatmul.mubr.msk.f32.gmra.mrb[62].mxu1 %vm268_vm1, %v997_v56 }
 0x178   : > { %v732_v12 = vpop.f32.mrb[64].mxu0  ;;  %2641 = vmatprep.mubr.msk.f32.mxu1 %vm2844_vm0, %v2845_v6 }
 0x179   : > { %v998_v57 = vmul.f32 %v732_v12, %v3219_v15  ;;  %v2376_v59 = vpop.f32.mrb[65].mxu0 }
 0x17b   : > { %2642 = vmatmul.mubr.msk.f32.gmra.mrb[64].mxu1 %vm268_vm1, %v998_v57 }
 0x17c   : > { %v737_v13 = vpop.f32.mrb[66].mxu0  ;;  %2644 = vmatprep.mubr.msk.f32.mxu1 %vm2844_vm0, %v2845_v6 }
 0x17d   : > { %v999_v61 = vmul.f32 %v737_v13, %v3226_v16  ;;  %v2379_v63 = vpop.f32.mrb[67].mxu0 }
 0x17f   : > { %2645 = vmatmul.mubr.msk.f32.gmra.mrb[66].mxu1 %vm268_vm1, %v999_v61 }
 0x180   : > { %v742_v14 = vpop.f32.mrb[68].mxu0  ;;  %2647 = vmatprep.mubr.msk.f32.mxu1 %vm2844_vm0, %v2845_v6 }
 0x181   : > { %v1000_v9 = vmul.f32 %v742_v14, %v3233_v17  ;;  %v2382_v0 = vpop.f32.mrb[69].mxu0 }
 0x183   : > { %2648 = vmatmul.mubr.msk.f32.gmra.mrb[68].mxu1 %vm268_vm1, %v1000_v9 }
 0x184   : > { %v747_v15 = vpop.f32.mrb[70].mxu0  ;;  %2650 = vmatprep.mubr.msk.f32.mxu1 %vm2844_vm0, %v2845_v6 }
 0x185   : > { %v1001_v7 = vmul.f32 %v747_v15, %v3240_v18  ;;  %v2385_v10 = vpop.f32.mrb[71].mxu0 }
 0x187   : > { %2651 = vmatmul.mubr.msk.f32.gmra.mrb[70].mxu1 %vm268_vm1, %v1001_v7 }
 0x188   : > { %v752_v16 = vpop.f32.mrb[72].mxu0  ;;  %2653 = vmatprep.mubr.msk.f32.mxu1 %vm2844_vm0, %v2845_v6 }
 0x189   : > { %v1002_v1 = vmul.f32 %v752_v16, %v3247_v19  ;;  %v2388_v3 = vpop.f32.mrb[73].mxu0 }
 0x18b   : > { %2654 = vmatmul.mubr.msk.f32.gmra.mrb[72].mxu1 %vm268_vm1, %v1002_v1 }
 0x18c   : > { %v757_v17 = vpop.f32.mrb[74].mxu0  ;;  %2656 = vmatprep.mubr.msk.f32.mxu1 %vm2844_vm0, %v2845_v6 }
 0x18d   : > { %v1003_v11 = vmul.f32 %v757_v17, %v3254_v20  ;;  %v2391_v56 = vpop.f32.mrb[75].mxu0 }
 0x18f   : > { %2657 = vmatmul.mubr.msk.f32.gmra.mrb[74].mxu1 %vm268_vm1, %v1003_v11 }
 0x190   : > { %v762_v18 = vpop.f32.mrb[76].mxu0  ;;  %2659 = vmatprep.mubr.msk.f32.mxu1 %vm2844_vm0, %v2845_v6 }
 0x191   : > { %v1004_v8 = vmul.f32 %v762_v18, %v3261_v21  ;;  %v2394_v12 = vpop.f32.mrb[77].mxu0 }
 0x193   : > { %2660 = vmatmul.mubr.msk.f32.gmra.mrb[76].mxu1 %vm268_vm1, %v1004_v8 }
 0x194   : > { %v767_v19 = vpop.f32.mrb[78].mxu0  ;;  %2662 = vmatprep.mubr.msk.f32.mxu1 %vm2844_vm0, %v2845_v6 }
 0x195   : > { %v1005_v57 = vmul.f32 %v767_v19, %v3268_v22  ;;  %v2397_v59 = vpop.f32.mrb[79].mxu0 }
 0x197   : > { %2663 = vmatmul.mubr.msk.f32.gmra.mrb[78].mxu1 %vm268_vm1, %v1005_v57 }
 0x198   : > { %v772_v20 = vpop.f32.mrb[80].mxu0  ;;  %2665 = vmatprep.mubr.msk.f32.mxu1 %vm2844_vm0, %v2845_v6 }
 0x199   : > { %v1006_v13 = vmul.f32 %v772_v20, %v3275_v23  ;;  %v2400_v61 = vpop.f32.mrb[81].mxu0 }
 0x19b   : > { %2666 = vmatmul.mubr.msk.f32.gmra.mrb[80].mxu1 %vm268_vm1, %v1006_v13 }
 0x19c   : > { %v777_v21 = vpop.f32.mrb[82].mxu0  ;;  %2668 = vmatprep.mubr.msk.f32.mxu1 %vm2844_vm0, %v2845_v6 }
 0x19d   : > { %v1007_v63 = vmul.f32 %v777_v21, %v3282_v39  ;;  %v2403_v14 = vpop.f32.mrb[83].mxu0 }
 0x19f   : > { %2669 = vmatmul.mubr.msk.f32.gmra.mrb[82].mxu1 %vm268_vm1, %v1007_v63 }
 0x1a0   : > { %v782_v22 = vpop.f32.mrb[84].mxu0  ;;  %2671 = vmatprep.mubr.msk.f32.mxu1 %vm2844_vm0, %v2845_v6 }
 0x1a1   : > { %v1008_v9 = vmul.f32 %v782_v22, %v3289_v40  ;;  %v2406_v0 = vpop.f32.mrb[85].mxu0 }
 0x1a3   : > { %2672 = vmatmul.mubr.msk.f32.gmra.mrb[84].mxu1 %vm268_vm1, %v1008_v9 }
 0x1a4   : > { %v787_v23 = vpop.f32.mrb[86].mxu0  ;;  %2674 = vmatprep.mubr.msk.f32.mxu1 %vm2844_vm0, %v2845_v6 }
 0x1a5   : > { %v1009_v15 = vmul.f32 %v787_v23, %v3296_v41  ;;  %v2409_v7 = vpop.f32.mrb[87].mxu0 }
 0x1a7   : > { %2675 = vmatmul.mubr.msk.f32.gmra.mrb[86].mxu1 %vm268_vm1, %v1009_v15 }
 0x1a8   : > { %v792_v39 = vpop.f32.mrb[88].mxu0  ;;  %2677 = vmatprep.mubr.msk.f32.mxu1 %vm2844_vm0, %v2845_v6 }
 0x1a9   : > { %v1010_v10 = vmul.f32 %v792_v39, %v3303_v43  ;;  %v2412_v16 = vpop.f32.mrb[89].mxu0 }
 0x1ab   : > { %2678 = vmatmul.mubr.msk.f32.gmra.mrb[88].mxu1 %vm268_vm1, %v1010_v10 }
 0x1ac   : > { %v797_v40 = vpop.f32.mrb[90].mxu0  ;;  %2680 = vmatprep.mubr.msk.f32.mxu1 %vm2844_vm0, %v2845_v6 }
 0x1ad   : > { %v1011_v1 = vmul.f32 %v797_v40, %v3310_v44  ;;  %v2415_v3 = vpop.f32.mrb[91].mxu0 }
 0x1af   : > { %2681 = vmatmul.mubr.msk.f32.gmra.mrb[90].mxu1 %vm268_vm1, %v1011_v1 }
 0x1b0   : > { %v802_v41 = vpop.f32.mrb[92].mxu0  ;;  %2683 = vmatprep.mubr.msk.f32.mxu1 %vm2844_vm0, %v2845_v6 }
 0x1b1   : > { %v1012_v17 = vmul.f32 %v802_v41, %v3317_v45  ;;  %v2418_v11 = vpop.f32.mrb[93].mxu0 }
 0x1b3   : > { %2684 = vmatmul.mubr.msk.f32.gmra.mrb[92].mxu1 %vm268_vm1, %v1012_v17 }
 0x1b4   : > { %v807_v43 = vpop.f32.mrb[94].mxu0  ;;  %2686 = vmatprep.mubr.msk.f32.mxu1 %vm2844_vm0, %v2845_v6 }
 0x1b5   : > { %v1013_v56 = vmul.f32 %v807_v43, %v3324_v47  ;;  %v2421_v18 = vpop.f32.mrb[95].mxu0 }
 0x1b7   : > { %2687 = vmatmul.mubr.msk.f32.gmra.mrb[94].mxu1 %vm268_vm1, %v1013_v56 }
 0x1b8   : > { %v812_v44 = vpop.f32.mrb[96].mxu0  ;;  %2689 = vmatprep.mubr.msk.f32.mxu1 %vm2844_vm0, %v2845_v6 }
 0x1b9   : > { %v1014_v8 = vmul.f32 %v812_v44, %v3331_v48  ;;  %v2424_v12 = vpop.f32.mrb[97].mxu0 }
 0x1bb   : > { %2690 = vmatmul.mubr.msk.f32.gmra.mrb[96].mxu1 %vm268_vm1, %v1014_v8 }
 0x1bc   : > { %v817_v45 = vpop.f32.mrb[98].mxu0  ;;  %2692 = vmatprep.mubr.msk.f32.mxu1 %vm2844_vm0, %v2845_v6 }
 0x1bd   : > { %v1015_v19 = vmul.f32 %v817_v45, %v3338_v49  ;;  %v2427_v57 = vpop.f32.mrb[99].mxu0 }
 0x1bf   : > { %2693 = vmatmul.mubr.msk.f32.gmra.mrb[98].mxu1 %vm268_vm1, %v1015_v19 }
 0x1c0   : > { %v822_v47 = vpop.f32.mrb[100].mxu0  ;;  %2695 = vmatprep.mubr.msk.f32.mxu1 %vm2844_vm0, %v2845_v6 }
 0x1c1   : > { %v1016_v59 = vmul.f32 %v822_v47, %v3345_v51  ;;  %v2430_v48 = vpop.f32.mrb[101].mxu0 }
 0x1c3   : > { %2696 = vmatmul.mubr.msk.f32.gmra.mrb[100].mxu1 %vm268_vm1, %v1016_v59 }
 0x1c4   : > { %v827_v20 = vpop.f32.mrb[102].mxu0  ;;  %2698 = vmatprep.mubr.msk.f32.mxu1 %vm2844_vm0, %v2845_v6 }
 0x1c5   : > { %v1017_v13 = vmul.f32 %v827_v20, %v3352_v52  ;;  %v2433_v49 = vpop.f32.mrb[103].mxu0 }
 0x1c7   : > { %2699 = vmatmul.mubr.msk.f32.gmra.mrb[102].mxu1 %vm268_vm1, %v1017_v13 }
 0x1c8   : > { %v832_v61 = vpop.f32.mrb[104].mxu0  ;;  %2701 = vmatprep.mubr.msk.f32.mxu1 %vm2844_vm0, %v2845_v6 }
 0x1c9   : > { %v1018_v21 = vmul.f32 %v832_v61, %v3359_v53  ;;  %v2436_v63 = vpop.f32.mrb[105].mxu0 }
 0x1cb   : > { %2702 = vmatmul.mubr.msk.f32.gmra.mrb[104].mxu1 %vm268_vm1, %v1018_v21 }
 0x1cc   : > { %v837_v51 = vpop.f32.mrb[106].mxu0  ;;  %2704 = vmatprep.mubr.msk.f32.mxu1 %vm2844_vm0, %v2845_v6 }
 0x1cd   : > { %v1019_v52 = vmul.f32 %v837_v51, %v3366_v55  ;;  %v2439_v14 = vpop.f32.mrb[107].mxu0 }
 0x1ce   : > { %v1363_v53 = vpop.f32.mrb[0].mxu1 }
 0x1cf   : > { %1758 = vst.msk [vmem:[%s3760_s5] sm:$0xff] %vm1757_vm2, %v1363_v53  ;;  %v2547_v22 = vpop.f32.mrb[1].mxu1  ;;  %2705 = vmatmul.mubr.msk.f32.gmra.mrb[106].mxu1 %vm268_vm1, %v1019_v52 }
 0x1d0   : > { %v842_v9 = vpop.f32.mrb[108].mxu0  ;;  %2707 = vmatprep.mubr.msk.f32.mxu1 %vm2844_vm0, %v2845_v6 }
 0x1d1   : > { %v1020_v0 = vmul.f32 %v842_v9, %v3374_v60  ;;  %v2442_v23 = vpop.f32.mrb[109].mxu0 }
 0x1d2   : > { %v1368_v15 = vpop.f32.mrb[2].mxu1 }
 0x1d3   : > { %1759 = vst.msk [vmem:[%s3760_s5 + $0x8] sm:$0xff] %vm1757_vm2, %v1368_v15  ;;  %v2550_v55 = vpop.f32.mrb[3].mxu1  ;;  %2708 = vmatmul.mubr.msk.f32.gmra.mrb[108].mxu1 %vm268_vm1, %v1020_v0 }
 0x1d4   : > { %v847_v7 = vpop.f32.mrb[110].mxu0  ;;  %2710 = vmatprep.mubr.msk.f32.mxu1 %vm2844_vm0, %v2845_v6 }
 0x1d5   : > { %v1021_v39 = vmul.f32 %v847_v7, %v3385_v24  ;;  %v2445_v10 = vpop.f32.mrb[111].mxu0 }
 0x1d6   : > { %v1373_v16 = vpop.f32.mrb[4].mxu1 }
 0x1d7   : > { %1760 = vst.msk [vmem:[%s3760_s5 + $0x10] sm:$0xff] %vm1757_vm2, %v1373_v16  ;;  %v2553_v60 = vpop.f32.mrb[5].mxu1  ;;  %2711 = vmatmul.mubr.msk.f32.gmra.mrb[110].mxu1 %vm268_vm1, %v1021_v39 }
 0x1d8   : > { %v852_v40 = vpop.f32.mrb[112].mxu0  ;;  %2713 = vmatprep.mubr.msk.f32.mxu1 %vm2844_vm0, %v2845_v6 }
 0x1d9   : > { %v1022_v1 = vmul.f32 %v852_v40, %v3396_v25  ;;  %v2448_v3 = vpop.f32.mrb[113].mxu0 }
 0x1da   : > { %v1378_v41 = vpop.f32.mrb[6].mxu1 }
 0x1db   : > { %1761 = vst.msk [vmem:[%s3760_s5 + $0x18] sm:$0xff] %vm1757_vm2, %v1378_v41  ;;  %v2556_v24 = vpop.f32.mrb[7].mxu1  ;;  %2714 = vmatmul.mubr.msk.f32.gmra.mrb[112].mxu1 %vm268_vm1, %v1022_v1 }
 0x1dc   : > { %v857_v17 = vpop.f32.mrb[114].mxu0  ;;  %2716 = vmatprep.mubr.msk.f32.mxu1 %vm2844_vm0, %v2845_v6 }
 0x1dd   : > { %v1023_v11 = vmul.f32 %v857_v17, %v3407_v26  ;;  %v2451_v43 = vpop.f32.mrb[115].mxu0 }
 0x1de   : > { %v1383_v56 = vpop.f32.mrb[8].mxu1 }
 0x1df   : > { %1762 = vst.msk [vmem:[%s3760_s5 + $0x20] sm:$0xff] %vm1757_vm2, %v1383_v56  ;;  %v2559_v25 = vpop.f32.mrb[9].mxu1  ;;  %2717 = vmatmul.mubr.msk.f32.gmra.mrb[114].mxu1 %vm268_vm1, %v1023_v11 }
 0x1e0   : > { %v862_v18 = vpop.f32.mrb[116].mxu0  ;;  %2719 = vmatprep.mubr.msk.f32.mxu1 %vm2844_vm0, %v2845_v6 }
 0x1e1   : > { %v1024_v44 = vmul.f32 %v862_v18, %v3418_v27  ;;  %v2454_v8 = vpop.f32.mrb[117].mxu0 }
 0x1e2   : > { %v1388_v12 = vpop.f32.mrb[10].mxu1 }
 0x1e3   : > { %1763 = vst.msk [vmem:[%s3760_s5 + $0x28] sm:$0xff] %vm1757_vm2, %v1388_v12  ;;  %v2562_v26 = vpop.f32.mrb[11].mxu1  ;;  %2720 = vmatmul.mubr.msk.f32.gmra.mrb[116].mxu1 %vm268_vm1, %v1024_v44 }
 0x1e4   : > { %v867_v45 = vpop.f32.mrb[118].mxu0  ;;  %2722 = vmatprep.mubr.msk.f32.mxu1 %vm2844_vm0, %v2845_v6 }
 0x1e5   : > { %v1025_v19 = vmul.f32 %v867_v45, %v3429_v28  ;;  %v2457_v57 = vpop.f32.mrb[119].mxu0 }
 0x1e6   : > { %v1393_v47 = vpop.f32.mrb[12].mxu1 }
 0x1e7   : > { %1764 = vst.msk [vmem:[%s3760_s5 + $0x30] sm:$0xff] %vm1757_vm2, %v1393_v47  ;;  %v2565_v27 = vpop.f32.mrb[13].mxu1  ;;  %2723 = vmatmul.mubr.msk.f32.gmra.mrb[118].mxu1 %vm268_vm1, %v1025_v19 }
 0x1e8   : > { %v872_v59 = vpop.f32.mrb[120].mxu0  ;;  %2725 = vmatprep.mubr.msk.f32.mxu1 %vm2844_vm0, %v2845_v6 }
 0x1e9   : > { %v1026_v48 = vmul.f32 %v872_v59, %v3440_v29  ;;  %v2460_v20 = vpop.f32.mrb[121].mxu0 }
 0x1ea   : > { %v1398_v13 = vpop.f32.mrb[14].mxu1 }
 0x1eb   : > { %1765 = vst.msk [vmem:[%s3760_s5 + $0x38] sm:$0xff] %vm1757_vm2, %v1398_v13  ;;  %v2568_v28 = vpop.f32.mrb[15].mxu1  ;;  %2726 = vmatmul.mubr.msk.f32.gmra.mrb[120].mxu1 %vm268_vm1, %v1026_v48 }
 0x1ec   : > { %v877_v49 = vpop.f32.mrb[122].mxu0  ;;  %2728 = vmatprep.mubr.msk.f32.mxu1 %vm2844_vm0, %v2845_v6 }
 0x1ed   : > { %v1027_v61 = vmul.f32 %v877_v49, %v3451_v30  ;;  %v2463_v21 = vpop.f32.mrb[123].mxu0 }
 0x1ee   : > { %v1403_v63 = vpop.f32.mrb[16].mxu1 }
 0x1ef   : > { %1766 = vst.msk [vmem:[%s3760_s5 + $0x40] sm:$0xff] %vm1757_vm2, %v1403_v63  ;;  %v2571_v29 = vpop.f32.mrb[17].mxu1  ;;  %2729 = vmatmul.mubr.msk.f32.gmra.mrb[122].mxu1 %vm268_vm1, %v1027_v61 }
 0x1f0   : > { %v882_v51 = vpop.f32.mrb[124].mxu0  ;;  %2731 = vmatprep.mubr.msk.f32.mxu1 %vm2844_vm0, %v2845_v6 }
 0x1f1   : > { %v1028_v52 = vmul.f32 %v882_v51, %v3462_v31  ;;  %v2466_v14 = vpop.f32.mrb[125].mxu0 }
 0x1f2   : > { %v1408_v53 = vpop.f32.mrb[18].mxu1 }
 0x1f3   : > { %1767 = vst.msk [vmem:[%s3760_s5 + $0x48] sm:$0xff] %vm1757_vm2, %v1408_v53  ;;  %v2574_v30 = vpop.f32.mrb[19].mxu1  ;;  %2732 = vmatmul.mubr.msk.f32.gmra.mrb[124].mxu1 %vm268_vm1, %v1028_v52 }
 0x1f4   : > { %v887_v22 = vpop.f32.mrb[126].mxu0  ;;  %2734 = vmatprep.mubr.msk.f32.mxu1 %vm2844_vm0, %v2845_v6 }
 0x1f5   : > { %v1029_v9 = vmul.f32 %v887_v22, %v3473_v32  ;;  %v2469_v0 = vpop.f32.mrb[127].mxu0 }
 0x1f6   : > { %v1413_v23 = vpop.f32.mrb[20].mxu1 }
 0x1f7   : > { %1768 = vst.msk [vmem:[%s3760_s5 + $0x50] sm:$0xff] %vm1757_vm2, %v1413_v23  ;;  %v2577_v31 = vpop.f32.mrb[21].mxu1  ;;  %2735 = vmatmul.mubr.msk.f32.gmra.mrb[126].mxu1 %vm268_vm1, %v1029_v9 }
 0x1f8   : > { %v892_v15 = vpop.f32.mrb[128].mxu0  ;;  %2737 = vmatprep.mubr.msk.f32.mxu1 %vm2844_vm0, %v2845_v6 }
 0x1f9   : > { %v1030_v55 = vmul.f32 %v892_v15, %v3484_v33  ;;  %v2472_v7 = vpop.f32.mrb[129].mxu0 }
 0x1fa   : > { %v1418_v39 = vpop.f32.mrb[22].mxu1 }
 0x1fb   : > { %1769 = vst.msk [vmem:[%s3760_s5 + $0x58] sm:$0xff] %vm1757_vm2, %v1418_v39  ;;  %v2580_v32 = vpop.f32.mrb[23].mxu1  ;;  %2738 = vmatmul.mubr.msk.f32.gmra.mrb[128].mxu1 %vm268_vm1, %v1030_v55 }
 0x1fc   : > { %v897_v10 = vpop.f32.mrb[130].mxu0  ;;  %2740 = vmatprep.mubr.msk.f32.mxu1 %vm2844_vm0, %v2845_v6 }
 0x1fd   : > { %v1031_v16 = vmul.f32 %v897_v10, %v3495_v34  ;;  %v2475_v60 = vpop.f32.mrb[131].mxu0 }
 0x1fe   : > { %v1423_v40 = vpop.f32.mrb[24].mxu1 }
 0x1ff   : > { %1770 = vst.msk [vmem:[%s3760_s5 + $0x60] sm:$0xff] %vm1757_vm2, %v1423_v40  ;;  %v2583_v33 = vpop.f32.mrb[25].mxu1  ;;  %2741 = vmatmul.mubr.msk.f32.gmra.mrb[130].mxu1 %vm268_vm1, %v1031_v16 }
 0x200   : > { %v902_v1 = vpop.f32.mrb[132].mxu0  ;;  %2743 = vmatprep.mubr.msk.f32.mxu1 %vm2844_vm0, %v2845_v6 }
 0x201   : > { %v1032_v3 = vmul.f32 %v902_v1, %v3506_v35  ;;  %v2478_v41 = vpop.f32.mrb[133].mxu0 }
 0x202   : > { %v1428_v24 = vpop.f32.mrb[26].mxu1 }
 0x203   : > { %1771 = vst.msk [vmem:[%s3760_s5 + $0x68] sm:$0xff] %vm1757_vm2, %v1428_v24  ;;  %v2586_v34 = vpop.f32.mrb[27].mxu1  ;;  %2744 = vmatmul.mubr.msk.f32.gmra.mrb[132].mxu1 %vm268_vm1, %v1032_v3 }
 0x204   : > { %v907_v17 = vpop.f32.mrb[134].mxu0  ;;  %2746 = vmatprep.mubr.msk.f32.mxu1 %vm2844_vm0, %v2845_v6 }
 0x205   : > { %v1033_v11 = vmul.f32 %v907_v17, %v3517_v36  ;;  %v2481_v43 = vpop.f32.mrb[135].mxu0 }
 0x206   : > { %v1433_v56 = vpop.f32.mrb[28].mxu1 }
 0x207   : > { %1772 = vst.msk [vmem:[%s3760_s5 + $0x70] sm:$0xff] %vm1757_vm2, %v1433_v56  ;;  %v2589_v35 = vpop.f32.mrb[29].mxu1  ;;  %2747 = vmatmul.mubr.msk.f32.gmra.mrb[134].mxu1 %vm268_vm1, %v1033_v11 }
 0x208   : > { %v912_v25 = vpop.f32.mrb[136].mxu0  ;;  %2749 = vmatprep.mubr.msk.f32.mxu1 %vm2844_vm0, %v2845_v6 }
 0x209   : > { %v1034_v18 = vmul.f32 %v912_v25, %v3528_v37  ;;  %v2484_v44 = vpop.f32.mrb[137].mxu0 }
 0x20a   : > { %v1438_v8 = vpop.f32.mrb[30].mxu1 }
 0x20b   : > { %1773 = vst.msk [vmem:[%s3760_s5 + $0x78] sm:$0xff] %vm1757_vm2, %v1438_v8  ;;  %v2592_v36 = vpop.f32.mrb[31].mxu1  ;;  %2750 = vmatmul.mubr.msk.f32.gmra.mrb[136].mxu1 %vm268_vm1, %v1034_v18 }
 0x20c   : > { %v917_v12 = vpop.f32.mrb[138].mxu0  ;;  %2752 = vmatprep.mubr.msk.f32.mxu1 %vm2844_vm0, %v2845_v6 }
 0x20d   : > { %v1035_v26 = vmul.f32 %v917_v12, %v3539_v38  ;;  %v2487_v45 = vpop.f32.mrb[139].mxu0 }
 0x20e   : > { %v1443_v19 = vpop.f32.mrb[32].mxu1 }
 0x20f   : > { %1774 = vst.msk [vmem:[%s3760_s5 + $0x80] sm:$0xff] %vm1757_vm2, %v1443_v19  ;;  %v2595_v37 = vpop.f32.mrb[33].mxu1  ;;  %2753 = vmatmul.mubr.msk.f32.gmra.mrb[138].mxu1 %vm268_vm1, %v1035_v26 }
 0x210   : > { %v922_v57 = vpop.f32.mrb[140].mxu0  ;;  %2755 = vmatprep.mubr.msk.f32.mxu1 %vm2844_vm0, %v2845_v6 }
 0x211   : > { %v1036_v47 = vmul.f32 %v922_v57, %v3550_v42  ;;  %v2490_v27 = vpop.f32.mrb[141].mxu0 }
 0x212   : > { %v1448_v59 = vpop.f32.mrb[34].mxu1 }
 0x213   : > { %1775 = vst.msk [vmem:[%s3760_s5 + $0x88] sm:$0xff] %vm1757_vm2, %v1448_v59  ;;  %v2598_v38 = vpop.f32.mrb[35].mxu1  ;;  %2756 = vmatmul.mubr.msk.f32.gmra.mrb[140].mxu1 %vm268_vm1, %v1036_v47 }
 0x214   : > { %v927_v48 = vpop.f32.mrb[142].mxu0  ;;  %2758 = vmatprep.mubr.msk.f32.mxu1 %vm2844_vm0, %v2845_v6 }
 0x215   : > { %v1037_v20 = vmul.f32 %v927_v48, %v3561_v46  ;;  %v2493_v13 = vpop.f32.mrb[143].mxu0 }
 0x216   : > { %v1453_v28 = vpop.f32.mrb[36].mxu1 }
 0x217   : > { %1776 = vst.msk [vmem:[%s3760_s5 + $0x90] sm:$0xff] %vm1757_vm2, %v1453_v28  ;;  %v2601_v42 = vpop.f32.mrb[37].mxu1  ;;  %2759 = vmatmul.mubr.msk.f32.gmra.mrb[142].mxu1 %vm268_vm1, %v1037_v20 }
 0x218   : > { %v932_v49 = vpop.f32.mrb[144].mxu0  ;;  %2761 = vmatprep.mubr.msk.f32.mxu1 %vm2844_vm0, %v2845_v6 }
 0x219   : > { %v1038_v61 = vmul.f32 %v932_v49, %v3572_v50  ;;  %v2496_v21 = vpop.f32.mrb[145].mxu0 }
 0x21a   : > { %v1458_v63 = vpop.f32.mrb[38].mxu1 }
 0x21b   : > { %1777 = vst.msk [vmem:[%s3760_s5 + $0x98] sm:$0xff] %vm1757_vm2, %v1458_v63  ;;  %v2604_v46 = vpop.f32.mrb[39].mxu1  ;;  %2762 = vmatmul.mubr.msk.f32.gmra.mrb[144].mxu1 %vm268_vm1, %v1038_v61 }
 0x21c   : > { %v937_v29 = vpop.f32.mrb[146].mxu0  ;;  %2764 = vmatprep.mubr.msk.f32.mxu1 %vm2844_vm0, %v2845_v6 }
 0x21d   : > { %v1039_v51 = vmul.f32 %v937_v29, %v3583_v54  ;;  %v2499_v52 = vpop.f32.mrb[147].mxu0 }
 0x21e   : > { %v1463_v14 = vpop.f32.mrb[40].mxu1 }
 0x21f   : > { %1778 = vst.msk [vmem:[%s3760_s5 + $0xa0] sm:$0xff] %vm1757_vm2, %v1463_v14  ;;  %v2607_v50 = vpop.f32.mrb[41].mxu1  ;;  %2765 = vmatmul.mubr.msk.f32.gmra.mrb[146].mxu1 %vm268_vm1, %v1039_v51 }
 0x220   : > { %v942_v53 = vpop.f32.mrb[148].mxu0  ;;  %2767 = vmatprep.mubr.msk.f32.mxu1 %vm2844_vm0, %v2845_v6 }
 0x221   : > { %v1040_v30 = vmul.f32 %v942_v53, %v3594_v58  ;;  %v2502_v22 = vpop.f32.mrb[149].mxu0 }
 0x222   : > { %v1468_v9 = vpop.f32.mrb[42].mxu1 }
 0x223   : > { %1779 = vst.msk [vmem:[%s3760_s5 + $0xa8] sm:$0xff] %vm1757_vm2, %v1468_v9  ;;  %v2610_v54 = vpop.f32.mrb[43].mxu1  ;;  %2768 = vmatmul.mubr.msk.f32.gmra.mrb[148].mxu1 %vm268_vm1, %v1040_v30 }
 0x224   : > { %v947_v0 = vpop.f32.mrb[150].mxu0  ;;  %2770 = vmatprep.mubr.msk.f32.mxu1 %vm2844_vm0, %v2845_v6 }
 0x225   : > { %v1041_v23 = vmul.f32 %v947_v0, %v3605_v62  ;;  %v2505_v31 = vpop.f32.mrb[151].mxu0 }
 0x226   : > { %v1473_v15 = vpop.f32.mrb[44].mxu1 }
 0x227   : > { %1780 = vst.msk [vmem:[%s3760_s5 + $0xb0] sm:$0xff] %vm1757_vm2, %v1473_v15  ;;  %v2613_v58 = vpop.f32.mrb[45].mxu1  ;;  %2771 = vmatmul.mubr.msk.f32.gmra.mrb[150].mxu1 %vm268_vm1, %v1041_v23 }
 0x228   : > { %v952_v55 = vpop.f32.mrb[152].mxu0  ;;  %2773 = vmatprep.mubr.msk.f32.mxu1 %vm2844_vm0, %v2845_v6 }
 0x229   : > { %v1042_v7 = vmul.f32 %v952_v55, %v3616_v2  ;;  %v2508_v39 = vpop.f32.mrb[153].mxu0 }
 0x22a   : > { %v1478_v32 = vpop.f32.mrb[46].mxu1 }
 0x22b   : > { %1781 = vst.msk [vmem:[%s3760_s5 + $0xb8] sm:$0xff] %vm1757_vm2, %v1478_v32  ;;  %v2616_v62 = vpop.f32.mrb[47].mxu1  ;;  %2774 = vmatmul.mubr.msk.f32.gmra.mrb[152].mxu1 %vm268_vm1, %v1042_v7 }
 0x22c   : > { %v957_v10 = vpop.f32.mrb[154].mxu0  ;;  %2776 = vmatprep.mubr.msk.f32.mxu1 %vm2844_vm0, %v2845_v6 }
 0x22d   : > { %v1043_v16 = vmul.f32 %v957_v10, %v3627_v4  ;;  %v2511_v60 = vpop.f32.mrb[155].mxu0 }
 0x22e   : > { %v1483_v40 = vpop.f32.mrb[48].mxu1 }
 0x22f   : > { %1782 = vst.msk [vmem:[%s3760_s5 + $0xc0] sm:$0xff] %vm1757_vm2, %v1483_v40  ;;  %v2619_v2 = vpop.f32.mrb[49].mxu1  ;;  %2777 = vmatmul.mubr.msk.f32.gmra.mrb[154].mxu1 %vm268_vm1, %v1043_v16 }
 0x230   : > { %v962_v33 = vpop.f32.mrb[156].mxu0  ;;  %2779 = vmatprep.mubr.msk.f32.mxu1 %vm2844_vm0, %v2845_v6 }
 0x231   : > { %v1044_v1 = vmul.f32 %v962_v33, %v3638_v5  ;;  %v2514_v3 = vpop.f32.mrb[157].mxu0 }
 0x232   : > { %v1488_v41 = vpop.f32.mrb[50].mxu1 }
 0x233   : > { %1783 = vst.msk [vmem:[%s3760_s5 + $0xc8] sm:$0xff] %vm1757_vm2, %v1488_v41  ;;  %v2622_v4 = vpop.f32.mrb[51].mxu1  ;;  %2780 = vmatmul.mubr.msk.f32.gmra.mrb[156].mxu1 %vm268_vm1, %v1044_v1 }
 0x236   : > { %v1493_v24 = vpop.f32.mrb[52].mxu1 }
 0x237   : > { %1784 = vst.msk [vmem:[%s3760_s5 + $0xd0] sm:$0xff] %vm1757_vm2, %v1493_v24  ;;  %v2625_v34 = vpop.f32.mrb[53].mxu1 }
 0x23a   : > { %v1498_v17 = vpop.f32.mrb[54].mxu1 }
 0x23b   : > { %1785 = vst.msk [vmem:[%s3760_s5 + $0xd8] sm:$0xff] %vm1757_vm2, %v1498_v17  ;;  %v2628_v6 = vpop.f32.mrb[55].mxu1 }
 0x23e   : > { %v1503_v5 = vpop.f32.mrb[56].mxu1 }
 0x23f   : > { %1786 = vst.msk [vmem:[%s3760_s5 + $0xe0] sm:$0xff] %vm1757_vm2, %v1503_v5  ;;  %v2631_v11 = vpop.f32.mrb[57].mxu1 }
 0x242   : > { %v1508_v43 = vpop.f32.mrb[58].mxu1 }
 0x243   : > { %1787 = vst.msk [vmem:[%s3760_s5 + $0xe8] sm:$0xff] %vm1757_vm2, %v1508_v43  ;;  %v2634_v56 = vpop.f32.mrb[59].mxu1 }
 0x246   : > { %v1513_v35 = vpop.f32.mrb[60].mxu1 }
 0x247   : > { %1788 = vst.msk [vmem:[%s3760_s5 + $0xf0] sm:$0xff] %vm1757_vm2, %v1513_v35  ;;  %v2637_v25 = vpop.f32.mrb[61].mxu1 }
 0x24a   : > { %v1518_v18 = vpop.f32.mrb[62].mxu1 }
 0x24b   : > { %1789 = vst.msk [vmem:[%s3760_s5 + $0xf8] sm:$0xff] %vm1757_vm2, %v1518_v18  ;;  %v2640_v44 = vpop.f32.mrb[63].mxu1 }
 0x24e   : > { %v1523_v8 = vpop.f32.mrb[64].mxu1 }
 0x24f   : > { %1790 = vst.msk [vmem:[%s3760_s5 + $0x100] sm:$0xff] %vm1757_vm2, %v1523_v8  ;;  %v2643_v36 = vpop.f32.mrb[65].mxu1 }
 0x252   : > { %v1528_v12 = vpop.f32.mrb[66].mxu1 }
 0x253   : > { %1791 = vst.msk [vmem:[%s3760_s5 + $0x108] sm:$0xff] %vm1757_vm2, %v1528_v12  ;;  %v2646_v26 = vpop.f32.mrb[67].mxu1 }
 0x256   : > { %v1533_v45 = vpop.f32.mrb[68].mxu1 }
 0x257   : > { %1792 = vst.msk [vmem:[%s3760_s5 + $0x110] sm:$0xff] %vm1757_vm2, %v1533_v45  ;;  %v2649_v19 = vpop.f32.mrb[69].mxu1 }
 0x25a   : > { %v1538_v37 = vpop.f32.mrb[70].mxu1 }
 0x25b   : > { %1793 = vst.msk [vmem:[%s3760_s5 + $0x118] sm:$0xff] %vm1757_vm2, %v1538_v37  ;;  %v2652_v57 = vpop.f32.mrb[71].mxu1 }
 0x25e   : > { %v1543_v47 = vpop.f32.mrb[72].mxu1 }
 0x25f   : > { %1794 = vst.msk [vmem:[%s3760_s5 + $0x120] sm:$0xff] %vm1757_vm2, %v1543_v47  ;;  %v2655_v27 = vpop.f32.mrb[73].mxu1 }
 0x262   : > { %v1548_v59 = vpop.f32.mrb[74].mxu1 }
 0x263   : > { %1795 = vst.msk [vmem:[%s3760_s5 + $0x128] sm:$0xff] %vm1757_vm2, %v1548_v59  ;;  %v2658_v38 = vpop.f32.mrb[75].mxu1 }
 0x266   : > { %v1553_v48 = vpop.f32.mrb[76].mxu1 }
 0x267   : > { %1796 = vst.msk [vmem:[%s3760_s5 + $0x130] sm:$0xff] %vm1757_vm2, %v1553_v48  ;;  %v2661_v20 = vpop.f32.mrb[77].mxu1 }
 0x26a   : > { %v1558_v13 = vpop.f32.mrb[78].mxu1 }
 0x26b   : > { %1797 = vst.msk [vmem:[%s3760_s5 + $0x138] sm:$0xff] %vm1757_vm2, %v1558_v13  ;;  %v2664_v28 = vpop.f32.mrb[79].mxu1 }
 0x26e   : > { %v1563_v42 = vpop.f32.mrb[80].mxu1 }
 0x26f   : > { %1798 = vst.msk [vmem:[%s3760_s5 + $0x140] sm:$0xff] %vm1757_vm2, %v1563_v42  ;;  %v2667_v49 = vpop.f32.mrb[81].mxu1 }
 0x272   : > { %v1568_v61 = vpop.f32.mrb[82].mxu1 }
 0x273   : > { %1799 = vst.msk [vmem:[%s3760_s5 + $0x148] sm:$0xff] %vm1757_vm2, %v1568_v61  ;;  %v2670_v21 = vpop.f32.mrb[83].mxu1 }
 0x276   : > { %v1573_v63 = vpop.f32.mrb[84].mxu1 }
 0x277   : > { %1800 = vst.msk [vmem:[%s3760_s5 + $0x150] sm:$0xff] %vm1757_vm2, %v1573_v63  ;;  %v2673_v46 = vpop.f32.mrb[85].mxu1 }
 0x27a   : > { %v1578_v29 = vpop.f32.mrb[86].mxu1 }
 0x27b   : > { %1801 = vst.msk [vmem:[%s3760_s5 + $0x158] sm:$0xff] %vm1757_vm2, %v1578_v29  ;;  %v2676_v51 = vpop.f32.mrb[87].mxu1 }
 0x27e   : > { %v1583_v52 = vpop.f32.mrb[88].mxu1 }
 0x27f   : > { %1802 = vst.msk [vmem:[%s3760_s5 + $0x160] sm:$0xff] %vm1757_vm2, %v1583_v52  ;;  %v2679_v14 = vpop.f32.mrb[89].mxu1 }
 0x282   : > { %v1588_v50 = vpop.f32.mrb[90].mxu1 }
 0x283   : > { %1803 = vst.msk [vmem:[%s3760_s5 + $0x168] sm:$0xff] %vm1757_vm2, %v1588_v50  ;;  %v2682_v53 = vpop.f32.mrb[91].mxu1 }
 0x286   : > { %v1593_v30 = vpop.f32.mrb[92].mxu1 }
 0x287   : > { %1804 = vst.msk [vmem:[%s3760_s5 + $0x170] sm:$0xff] %vm1757_vm2, %v1593_v30  ;;  %v2685_v22 = vpop.f32.mrb[93].mxu1 }
 0x28a   : > { %v1598_v9 = vpop.f32.mrb[94].mxu1 }
 0x28b   : > { %1805 = vst.msk [vmem:[%s3760_s5 + $0x178] sm:$0xff] %vm1757_vm2, %v1598_v9  ;;  %v2688_v54 = vpop.f32.mrb[95].mxu1 }
 0x28e   : > { %v1603_v0 = vpop.f32.mrb[96].mxu1 }
 0x28f   : > { %1806 = vst.msk [vmem:[%s3760_s5 + $0x180] sm:$0xff] %vm1757_vm2, %v1603_v0  ;;  %v2691_v23 = vpop.f32.mrb[97].mxu1 }
 0x292   : > { %v1608_v31 = vpop.f32.mrb[98].mxu1 }
 0x293   : > { %1807 = vst.msk [vmem:[%s3760_s5 + $0x188] sm:$0xff] %vm1757_vm2, %v1608_v31  ;;  %v2694_v15 = vpop.f32.mrb[99].mxu1 }
 0x296   : > { %v1613_v58 = vpop.f32.mrb[100].mxu1 }
 0x297   : > { %1808 = vst.msk [vmem:[%s3760_s5 + $0x190] sm:$0xff] %vm1757_vm2, %v1613_v58  ;;  %v2697_v55 = vpop.f32.mrb[101].mxu1 }
 0x29a   : > { %v1618_v7 = vpop.f32.mrb[102].mxu1 }
 0x29b   : > { %1809 = vst.msk [vmem:[%s3760_s5 + $0x198] sm:$0xff] %vm1757_vm2, %v1618_v7  ;;  %v2700_v39 = vpop.f32.mrb[103].mxu1 }
 0x29e   : > { %v1623_v32 = vpop.f32.mrb[104].mxu1 }
 0x29f   : > { %1810 = vst.msk [vmem:[%s3760_s5 + $0x1a0] sm:$0xff] %vm1757_vm2, %v1623_v32  ;;  %v2703_v62 = vpop.f32.mrb[105].mxu1 }
 0x2a2   : > { %v1628_v10 = vpop.f32.mrb[106].mxu1 }
 0x2a3   : > { %1811 = vst.msk [vmem:[%s3760_s5 + $0x1a8] sm:$0xff] %vm1757_vm2, %v1628_v10  ;;  %v2706_v16 = vpop.f32.mrb[107].mxu1 }
 0x2a6   : > { %v1633_v60 = vpop.f32.mrb[108].mxu1 }
 0x2a7   : > { %1812 = vst.msk [vmem:[%s3760_s5 + $0x1b0] sm:$0xff] %vm1757_vm2, %v1633_v60  ;;  %v2709_v40 = vpop.f32.mrb[109].mxu1 }
 0x2aa   : > { %v1638_v2 = vpop.f32.mrb[110].mxu1 }
 0x2ab   : > { %1813 = vst.msk [vmem:[%s3760_s5 + $0x1b8] sm:$0xff] %vm1757_vm2, %v1638_v2  ;;  %v2712_v33 = vpop.f32.mrb[111].mxu1 }
 0x2ae   : > { %v1643_v1 = vpop.f32.mrb[112].mxu1 }
 0x2af   : > { %1814 = vst.msk [vmem:[%s3760_s5 + $0x1c0] sm:$0xff] %vm1757_vm2, %v1643_v1  ;;  %v2715_v3 = vpop.f32.mrb[113].mxu1 }
 0x2b2   : > { %v1648_v41 = vpop.f32.mrb[114].mxu1 }
 0x2b3   : > { %1815 = vst.msk [vmem:[%s3760_s5 + $0x1c8] sm:$0xff] %vm1757_vm2, %v1648_v41  ;;  %v2718_v4 = vpop.f32.mrb[115].mxu1 }
 0x2b6   : > { %v1653_v24 = vpop.f32.mrb[116].mxu1 }
 0x2b7   : > { %1816 = vst.msk [vmem:[%s3760_s5 + $0x1d0] sm:$0xff] %vm1757_vm2, %v1653_v24  ;;  %v2721_v34 = vpop.f32.mrb[117].mxu1 }
 0x2ba   : > { %v1658_v17 = vpop.f32.mrb[118].mxu1 }
 0x2bb   : > { %1817 = vst.msk [vmem:[%s3760_s5 + $0x1d8] sm:$0xff] %vm1757_vm2, %v1658_v17  ;;  %v2724_v6 = vpop.f32.mrb[119].mxu1 }
 0x2be   : > { %v1663_v5 = vpop.f32.mrb[120].mxu1 }
 0x2bf   : > { %1818 = vst.msk [vmem:[%s3760_s5 + $0x1e0] sm:$0xff] %vm1757_vm2, %v1663_v5  ;;  %v2727_v11 = vpop.f32.mrb[121].mxu1 }
 0x2c2   : > { %v1668_v43 = vpop.f32.mrb[122].mxu1 }
 0x2c3   : > { %1819 = vst.msk [vmem:[%s3760_s5 + $0x1e8] sm:$0xff] %vm1757_vm2, %v1668_v43  ;;  %v2730_v56 = vpop.f32.mrb[123].mxu1 }
 0x2c6   : > { %v1673_v35 = vpop.f32.mrb[124].mxu1 }
 0x2c7   : > { %1820 = vst.msk [vmem:[%s3760_s5 + $0x1f0] sm:$0xff] %vm1757_vm2, %v1673_v35  ;;  %v2733_v25 = vpop.f32.mrb[125].mxu1 }
 0x2ca   : > { %v1678_v18 = vpop.f32.mrb[126].mxu1 }
 0x2cb   : > { %1821 = vst.msk [vmem:[%s3760_s5 + $0x1f8] sm:$0xff] %vm1757_vm2, %v1678_v18  ;;  %v2736_v44 = vpop.f32.mrb[127].mxu1 }
 0x2ce   : > { %v1683_v8 = vpop.f32.mrb[128].mxu1 }
 0x2cf   : > { %1822 = vst.msk [vmem:[%s3760_s5 + $0x200] sm:$0xff] %vm1757_vm2, %v1683_v8  ;;  %v2739_v36 = vpop.f32.mrb[129].mxu1 }
 0x2d2   : > { %v1688_v12 = vpop.f32.mrb[130].mxu1 }
 0x2d3   : > { %1823 = vst.msk [vmem:[%s3760_s5 + $0x208] sm:$0xff] %vm1757_vm2, %v1688_v12  ;;  %v2742_v26 = vpop.f32.mrb[131].mxu1 }
 0x2d6   : > { %v1693_v45 = vpop.f32.mrb[132].mxu1 }
 0x2d7   : > { %1824 = vst.msk [vmem:[%s3760_s5 + $0x210] sm:$0xff] %vm1757_vm2, %v1693_v45  ;;  %v2745_v19 = vpop.f32.mrb[133].mxu1 }
 0x2da   : > { %v1698_v37 = vpop.f32.mrb[134].mxu1 }
 0x2db   : > { %1825 = vst.msk [vmem:[%s3760_s5 + $0x218] sm:$0xff] %vm1757_vm2, %v1698_v37  ;;  %v2748_v57 = vpop.f32.mrb[135].mxu1 }
 0x2de   : > { %v1703_v47 = vpop.f32.mrb[136].mxu1 }
 0x2df   : > { %1826 = vst.msk [vmem:[%s3760_s5 + $0x220] sm:$0xff] %vm1757_vm2, %v1703_v47  ;;  %v2751_v27 = vpop.f32.mrb[137].mxu1 }
 0x2e2   : > { %v1708_v59 = vpop.f32.mrb[138].mxu1 }
 0x2e3   : > { %1827 = vst.msk [vmem:[%s3760_s5 + $0x228] sm:$0xff] %vm1757_vm2, %v1708_v59  ;;  %v2754_v38 = vpop.f32.mrb[139].mxu1 }
 0x2e6   : > { %v1713_v48 = vpop.f32.mrb[140].mxu1 }
 0x2e7   : > { %1828 = vst.msk [vmem:[%s3760_s5 + $0x230] sm:$0xff] %vm1757_vm2, %v1713_v48  ;;  %v2757_v20 = vpop.f32.mrb[141].mxu1 }
 0x2ea   : > { %v1718_v13 = vpop.f32.mrb[142].mxu1 }
 0x2eb   : > { %1829 = vst.msk [vmem:[%s3760_s5 + $0x238] sm:$0xff] %vm1757_vm2, %v1718_v13  ;;  %v2760_v28 = vpop.f32.mrb[143].mxu1 }
 0x2ee   : > { %v1723_v42 = vpop.f32.mrb[144].mxu1 }
 0x2ef   : > { %1830 = vst.msk [vmem:[%s3760_s5 + $0x240] sm:$0xff] %vm1757_vm2, %v1723_v42  ;;  %v2763_v49 = vpop.f32.mrb[145].mxu1 }
 0x2f2   : > { %v1728_v61 = vpop.f32.mrb[146].mxu1 }
 0x2f3   : > { %1831 = vst.msk [vmem:[%s3760_s5 + $0x248] sm:$0xff] %vm1757_vm2, %v1728_v61  ;;  %v2766_v21 = vpop.f32.mrb[147].mxu1 }
 0x2f6   : > { %v1733_v63 = vpop.f32.mrb[148].mxu1 }
 0x2f7   : > { %1832 = vst.msk [vmem:[%s3760_s5 + $0x250] sm:$0xff] %vm1757_vm2, %v1733_v63  ;;  %v2769_v46 = vpop.f32.mrb[149].mxu1 }
 0x2fa   : > { %v1738_v29 = vpop.f32.mrb[150].mxu1 }
 0x2fb   : > { %1833 = vst.msk [vmem:[%s3760_s5 + $0x258] sm:$0xff] %vm1757_vm2, %v1738_v29  ;;  %v2772_v51 = vpop.f32.mrb[151].mxu1 }
 0x2fe   : > { %v1743_v52 = vpop.f32.mrb[152].mxu1 }
 0x2ff   : > { %1834 = vst.msk [vmem:[%s3760_s5 + $0x260] sm:$0xff] %vm1757_vm2, %v1743_v52  ;;  %v2775_v14 = vpop.f32.mrb[153].mxu1 }
 0x302   : > { %v1748_v50 = vpop.f32.mrb[154].mxu1 }
 0x303   : > { %1835 = vst.msk [vmem:[%s3760_s5 + $0x268] sm:$0xff] %vm1757_vm2, %v1748_v50  ;;  %v2778_v53 = vpop.f32.mrb[155].mxu1 }
 0x306   : > { %v1753_v30 = vpop.f32.mrb[156].mxu1 }
 0x307   : > { %1836 = vst.msk [vmem:[%s3760_s5 + $0x270] sm:$0xff] %vm1757_vm2, %v1753_v30  ;;  %v2781_v22 = vpop.f32.mrb[157].mxu1 }
 0x308 PF: > { %s13_s12 = sadd.s32 1, %s2841_s12  }
 0x309   : > { %p10_p4 = scmp.ge.s32.totalorder %s13_s12, 6  }
 0x30b   :  { %12 = sbr.rel (!%p10_p4) target bundleno = 1 (0x1), region = 62 }

</bundles_post_ra>
